<compile_context>
chip_gen: v6e
topology: v6e:2x2x1
jax: 0.10.0
libtpu: 0.0.40
codegen_flags: <defaults>
</compile_context>

<pallas_src>
import jax
import jax.numpy as jnp
from jax.experimental import pallas as pl
from jax.experimental.pallas import tpu as pltpu

# ---------------------------------------------------------------------------
# Synthetic "cmd_args" hyper-parameters (the reference module reads these).
# ---------------------------------------------------------------------------
FEAT_DIM   = 16   # cmd_args.feat_dim   (one-hot node-tag dimension)
LATENT_DIM = 32   # cmd_args.latent_dim
MULTI_H    = 4    # cmd_args.multi_h_emb_weight (readout attention heads)
MAX_K      = 3    # cmd_args.max_k     (propagation hops per block)
MAX_BLOCK  = 2    # cmd_args.max_block (residual message-passing blocks)
HIDDEN     = 32   # cmd_args.hidden
NUM_CLASS  = 8    # cmd_args.num_class
EMB_DIM    = LATENT_DIM * MULTI_H     # out_dim fed to the MLP (out_dim==0 case)

NUM_GRAPHS       = 2
NODES_PER_GRAPH  = 16
NUM_NODES        = NUM_GRAPHS * NODES_PER_GRAPH


def _full_spec(shape):
    nd = len(shape)
    return pl.BlockSpec(shape, lambda i, nd=nd: (0,) * nd)


# ---------------------------------------------------------------------------
# Fused kernel: AttentionEmbedMeanField + MLPClassifier
# ---------------------------------------------------------------------------
def _classifier_kernel(x_ref, a_ref, g_ref, y_ref,
                       wn_ref, bn_ref, wconv_ref, bconv_ref,
                       whop_ref, vhop_ref, watt_ref, vatt_ref,
                       w1_ref, b1_ref, w2_ref, b2_ref,
                       logp_ref, loss_ref):
    x = x_ref[...]                                      # [N, F]
    a = a_ref[...]                                      # [N, N]
    g = g_ref[...]                                      # [B, N]
    N = a.shape[0]
    B = g.shape[0]
    D = LATENT_DIM
    H = MULTI_H

    # ---- AttentionEmbedMeanField ------------------------------------------
    # node features -> latent space + ReLU (mean-field input potential)
    x0 = jnp.maximum(
        jnp.dot(x, wn_ref[...], preferred_element_type=jnp.float32) + bn_ref[...],
        0.0)                                            # [N, D]

    cur = x0
    for blk in range(MAX_BLOCK):
        inp = cur if blk == 0 else cur + x0             # residual block input

        # multi-hop propagation: A^1, A^2, ..., A^K applied to block input
        hops = []
        h = inp
        for _ in range(MAX_K):
            h = jnp.dot(a, h, preferred_element_type=jnp.float32)      # [N, D]
            hops.append(h)

        # hop attention: one batched tanh matmul over all K hops, then
        # VPU multiply + lane reduce for the scores (no [*,1] MXU matvecs).
        hop_stack = jnp.concatenate(hops, axis=0)                       # [K*N, D]
        t_all = jnp.tanh(jnp.dot(hop_stack, whop_ref[...],
                                 preferred_element_type=jnp.float32))   # [K*N, D]
        s_all = jnp.sum(t_all * vhop_ref[...], axis=-1, keepdims=True)  # [K*N, 1]
        scores = [s_all[k * N:(k + 1) * N] for k in range(MAX_K)]       # K x [N,1]

        m = scores[0]
        for k in range(1, MAX_K):
            m = jnp.maximum(m, scores[k])
        exps = [jnp.exp(scores[k] - m) for k in range(MAX_K)]
        denom = exps[0]
        for k in range(1, MAX_K):
            denom = denom + exps[k]
        inv = pl.reciprocal(denom, approx=True)                         # EUP slot
        comb = (exps[0] * inv) * hops[0]
        for k in range(1, MAX_K):
            comb = comb + (exps[k] * inv) * hops[k]                     # [N, D]

        # block-wise linear + ReLU
        cur = jnp.maximum(
            jnp.dot(comb, wconv_ref[blk], preferred_element_type=jnp.float32)
            + bconv_ref[blk],
            0.0)                                                        # [N, D]

    # ---- multi-head attention graph readout (heads batched) ----------------
    # single lane-dense tanh matmul for all H heads
    t_att = jnp.tanh(jnp.dot(cur, watt_ref[...],
                             preferred_element_type=jnp.float32))       # [N, H*D]
    prod = t_att * vatt_ref[...]                                        # [N, H*D]
    sc_cols = [jnp.sum(prod[:, hd * D:(hd + 1) * D], axis=-1, keepdims=True)
               for hd in range(H)]                                      # H x [N,1]
    sc_hn = jnp.concatenate(sc_cols, axis=1).T                          # [H, N]

    neg = -1e30
    # masked softmax over nodes, batched over (head, graph) rows: [H*B, N]
    g_rep = jnp.concatenate([g] * H, axis=0)                            # [H*B, N]
    sc_rep = jnp.concatenate(
        [jnp.broadcast_to(sc_hn[hd:hd + 1, :], (B, N)) for hd in range(H)],
        axis=0)                                                         # [H*B, N]
    sb = g_rep * sc_rep + (1.0 - g_rep) * neg                           # [H*B, N]
    sb = sb - jnp.max(sb, axis=1, keepdims=True)
    eb = jnp.exp(sb) * g_rep
    att = eb * pl.reciprocal(jnp.sum(eb, axis=1, keepdims=True), approx=True)

    # single weighted-sum matmul for all heads, then lane-concat into [B, H*D]
    ghd = jnp.dot(att, cur, preferred_element_type=jnp.float32)         # [H*B, D]
    emb = jnp.concatenate([ghd[hd * B:(hd + 1) * B, :] for hd in range(H)],
                          axis=1)                                       # [B, H*D]

    # ---- MLPClassifier (fused; embedding never leaves VMEM) ----------------
    h1 = jnp.maximum(
        jnp.dot(emb, w1_ref[...], preferred_element_type=jnp.float32) + b1_ref[...],
        0.0)                                                            # [B, hidden]
    logits = jnp.dot(h1, w2_ref[...], preferred_element_type=jnp.float32) \
        + b2_ref[...]                                                   # [B, C]
    z = logits - jnp.max(logits, axis=1, keepdims=True)
    logp = z - jnp.log(jnp.sum(jnp.exp(z), axis=1, keepdims=True))      # log_softmax
    logp_ref[...] = logp

    y = y_ref[...]                                                      # one-hot [B, C]
    nll = -jnp.sum(y * logp) / y.shape[0]                               # reg term == 0
    loss_ref[...] = jnp.reshape(nll, (1, 1))


# ---------------------------------------------------------------------------
# Full Classifier forward (single fused pallas_call)
# ---------------------------------------------------------------------------
def classifier_forward(params, node_feat, a_norm, g_mask, y_onehot):
    B = g_mask.shape[0]
    D, H = LATENT_DIM, MULTI_H

    # layout plumbing outside the kernel: concatenate heads along lanes
    watt_cat = jnp.transpose(params["watt"], (1, 0, 2)).reshape(D, H * D)  # [D, H*D]
    vatt_flat = params["vatt"][:, :, 0].reshape(1, H * D)                  # [1, H*D]
    vhop_row = params["vhop"].reshape(1, D)                                # [1, D]

    args = (node_feat, a_norm, g_mask, y_onehot,
            params["wn"], params["bn"], params["wconv"], params["bconv"],
            params["whop"], vhop_row, watt_cat, vatt_flat,
            params["w1"], params["b1"], params["w2"], params["b2"])

    logp, loss = pl.pallas_call(
        _classifier_kernel,
        grid=(1,),
        in_specs=[_full_spec(t.shape) for t in args],
        out_specs=[_full_spec((B, NUM_CLASS)), _full_spec((1, 1))],
        out_shape=(jax.ShapeDtypeStruct((B, NUM_CLASS), jnp.float32),
                   jax.ShapeDtypeStruct((1, 1), jnp.float32)),
        compiler_params=pltpu.CompilerParams(
            dimension_semantics=("arbitrary",)),
    )(*args)
    return logp, loss


def init_params(key):
    ks = jax.random.split(key, 8)
    sc = 0.1
    return {
        "wn":    jax.random.normal(ks[0], (FEAT_DIM, LATENT_DIM), jnp.float32) * sc,
        "bn":    jnp.zeros((1, LATENT_DIM), jnp.float32),
        "wconv": jax.random.normal(ks[1], (MAX_BLOCK, LATENT_DIM, LATENT_DIM), jnp.float32) * sc,
        "bconv": jnp.zeros((MAX_BLOCK, 1, LATENT_DIM), jnp.float32),
        "whop":  jax.random.normal(ks[2], (LATENT_DIM, LATENT_DIM), jnp.float32) * sc,
        "vhop":  jax.random.normal(ks[3], (LATENT_DIM, 1), jnp.float32) * sc,
        "watt":  jax.random.normal(ks[4], (MULTI_H, LATENT_DIM, LATENT_DIM), jnp.float32) * sc,
        "vatt":  jax.random.normal(ks[5], (MULTI_H, LATENT_DIM, 1), jnp.float32) * sc,
        "w1":    jax.random.normal(ks[6], (EMB_DIM, HIDDEN), jnp.float32) * sc,
        "b1":    jnp.zeros((1, HIDDEN), jnp.float32),
        "w2":    jax.random.normal(ks[7], (HIDDEN, NUM_CLASS), jnp.float32) * sc,
        "b2":    jnp.zeros((1, NUM_CLASS), jnp.float32),
    }


if __name__ == "__main__":
    key = jax.random.PRNGKey(0)
    k_tag, k_lab, k_adj, k_par = jax.random.split(key, 4)

    # PrepareFeatureLabel: one-hot node tags -> node_feat [N, F]
    node_tags = jax.random.randint(k_tag, (NUM_NODES,), 0, FEAT_DIM)
    node_feat = jax.nn.one_hot(node_tags, FEAT_DIM, dtype=jnp.float32)

    labels = jax.random.randint(k_lab, (NUM_GRAPHS,), 0, NUM_CLASS)
    y_onehot = jax.nn.one_hot(labels, NUM_CLASS, dtype=jnp.float32)

    # block-diagonal random adjacency (one block per graph), symmetric,
    # with self loops, row-normalized (mean-field aggregation).
    adj = jnp.zeros((NUM_NODES, NUM_NODES), jnp.float32)
    adj_keys = jax.random.split(k_adj, NUM_GRAPHS)
    for b in range(NUM_GRAPHS):
        blk = (jax.random.uniform(adj_keys[b], (NODES_PER_GRAPH, NODES_PER_GRAPH))
               < 0.3).astype(jnp.float32)
        blk = jnp.triu(blk, 1)
        blk = blk + blk.T
        s = b * NODES_PER_GRAPH
        adj = adj.at[s:s + NODES_PER_GRAPH, s:s + NODES_PER_GRAPH].set(blk)
    adj = adj + jnp.eye(NUM_NODES, dtype=jnp.float32)
    a_norm = adj / jnp.sum(adj, axis=1, keepdims=True)

    # graph membership matrix G [B, N]
    g_mask = jnp.zeros((NUM_GRAPHS, NUM_NODES), jnp.float32)
    for b in range(NUM_GRAPHS):
        s = b * NODES_PER_GRAPH
        g_mask = g_mask.at[b, s:s + NODES_PER_GRAPH].set(1.0)

    params = init_params(k_par)

    fwd = jax.jit(classifier_forward)
    logp, loss = fwd(params, node_feat, a_norm, g_mask, y_onehot)
    jax.block_until_ready((logp, loss))

    assert logp.shape == (NUM_GRAPHS, NUM_CLASS)
    assert loss.shape == (1, 1)
    print("KERNEL_OK")
</pallas_src>

<mosaic_0001>
module attributes {stable_mosaic.version = 11 : i64} {
  func.func @_classifier_kernel(%arg0: i32, %arg1: memref<32x16xf32, #tpu.memory_space<vmem>>, %arg2: memref<32x32xf32, #tpu.memory_space<vmem>>, %arg3: memref<2x32xf32, #tpu.memory_space<vmem>>, %arg4: memref<2x8xf32, #tpu.memory_space<vmem>>, %arg5: memref<16x32xf32, #tpu.memory_space<vmem>>, %arg6: memref<1x32xf32, #tpu.memory_space<vmem>>, %arg7: memref<2x32x32xf32, #tpu.memory_space<vmem>>, %arg8: memref<2x1x32xf32, #tpu.memory_space<vmem>>, %arg9: memref<32x32xf32, #tpu.memory_space<vmem>>, %arg10: memref<1x32xf32, #tpu.memory_space<vmem>>, %arg11: memref<32x128xf32, #tpu.memory_space<vmem>>, %arg12: memref<1x128xf32, #tpu.memory_space<vmem>>, %arg13: memref<128x32xf32, #tpu.memory_space<vmem>>, %arg14: memref<1x32xf32, #tpu.memory_space<vmem>>, %arg15: memref<32x8xf32, #tpu.memory_space<vmem>>, %arg16: memref<1x8xf32, #tpu.memory_space<vmem>>, %arg17: memref<2x8xf32, #tpu.memory_space<vmem>>, %arg18: memref<1x1xf32, #tpu.memory_space<vmem>>) attributes {dimension_semantics = [#tpu.dimension_semantics<arbitrary>], iteration_bounds = array<i64: 1>, scalar_prefetch = 0 : i64, scratch_operands = 0 : i64, tpu.core_type = #tpu.core_type<tc>, window_params = [{pipeline_mode = #tpu.pipeline_mode<synchronous>, transform_indices = @transform_0, window_bounds = array<i64: 32, 16>}, {pipeline_mode = #tpu.pipeline_mode<synchronous>, transform_indices = @transform_1, window_bounds = array<i64: 32, 32>}, {pipeline_mode = #tpu.pipeline_mode<synchronous>, transform_indices = @transform_2, window_bounds = array<i64: 2, 32>}, {pipeline_mode = #tpu.pipeline_mode<synchronous>, transform_indices = @transform_3, window_bounds = array<i64: 2, 8>}, {pipeline_mode = #tpu.pipeline_mode<synchronous>, transform_indices = @transform_4, window_bounds = array<i64: 16, 32>}, {pipeline_mode = #tpu.pipeline_mode<synchronous>, transform_indices = @transform_5, window_bounds = array<i64: 1, 32>}, {pipeline_mode = #tpu.pipeline_mode<synchronous>, transform_indices = @transform_6, window_bounds = array<i64: 2, 32, 32>}, {pipeline_mode = #tpu.pipeline_mode<synchronous>, transform_indices = @transform_7, window_bounds = array<i64: 2, 1, 32>}, {pipeline_mode = #tpu.pipeline_mode<synchronous>, transform_indices = @transform_8, window_bounds = array<i64: 32, 32>}, {pipeline_mode = #tpu.pipeline_mode<synchronous>, transform_indices = @transform_9, window_bounds = array<i64: 1, 32>}, {pipeline_mode = #tpu.pipeline_mode<synchronous>, transform_indices = @transform_10, window_bounds = array<i64: 32, 128>}, {pipeline_mode = #tpu.pipeline_mode<synchronous>, transform_indices = @transform_11, window_bounds = array<i64: 1, 128>}, {pipeline_mode = #tpu.pipeline_mode<synchronous>, transform_indices = @transform_12, window_bounds = array<i64: 128, 32>}, {pipeline_mode = #tpu.pipeline_mode<synchronous>, transform_indices = @transform_13, window_bounds = array<i64: 1, 32>}, {pipeline_mode = #tpu.pipeline_mode<synchronous>, transform_indices = @transform_14, window_bounds = array<i64: 32, 8>}, {pipeline_mode = #tpu.pipeline_mode<synchronous>, transform_indices = @transform_15, window_bounds = array<i64: 1, 8>}, {pipeline_mode = #tpu.pipeline_mode<synchronous>, transform_indices = @transform_16, window_bounds = array<i64: 2, 8>}, {pipeline_mode = #tpu.pipeline_mode<synchronous>, transform_indices = @transform_17, window_bounds = array<i64: 1, 1>}]} {
    %c0 = arith.constant 0 : index
    %c0_0 = arith.constant 0 : index
    %0 = vector.load %arg1[%c0, %c0_0] : memref<32x16xf32, #tpu.memory_space<vmem>>, vector<32x16xf32>
    %c0_1 = arith.constant 0 : index
    %c0_2 = arith.constant 0 : index
    %1 = vector.load %arg2[%c0_1, %c0_2] : memref<32x32xf32, #tpu.memory_space<vmem>>, vector<32x32xf32>
    %c0_3 = arith.constant 0 : index
    %c0_4 = arith.constant 0 : index
    %2 = vector.load %arg3[%c0_3, %c0_4] : memref<2x32xf32, #tpu.memory_space<vmem>>, vector<2x32xf32>
    %c0_5 = arith.constant 0 : index
    %c0_6 = arith.constant 0 : index
    %3 = vector.load %arg5[%c0_5, %c0_6] : memref<16x32xf32, #tpu.memory_space<vmem>>, vector<16x32xf32>
    %cst = arith.constant dense<0.000000e+00> : vector<32x32xf32>
    %4 = tpu.matmul %0, %3, %cst {dimension_numbers = #tpu.dot_dimension_numbers<[1], [0], [0], [1], [0, 0, 1, 1], [], []>} : vector<32x16xf32>, vector<16x32xf32>, vector<32x32xf32> -> vector<32x32xf32>
    %c0_7 = arith.constant 0 : index
    %c0_8 = arith.constant 0 : index
    %5 = vector.load %arg6[%c0_7, %c0_8] : memref<1x32xf32, #tpu.memory_space<vmem>>, vector<1x32xf32>
    %6 = vector.broadcast %5 : vector<1x32xf32> to vector<32x32xf32>
    %7 = arith.addf %4, %6 : vector<32x32xf32>
    %cst_9 = arith.constant 0.000000e+00 : f32
    %8 = vector.broadcast %cst_9 : f32 to vector<32x32xf32>
    %9 = arith.maximumf %7, %8 : vector<32x32xf32>
    %cst_10 = arith.constant dense<0.000000e+00> : vector<32x32xf32>
    %10 = tpu.matmul %1, %9, %cst_10 {dimension_numbers = #tpu.dot_dimension_numbers<[1], [0], [0], [1], [0, 0, 1, 1], [], []>} : vector<32x32xf32>, vector<32x32xf32>, vector<32x32xf32> -> vector<32x32xf32>
    %cst_11 = arith.constant dense<0.000000e+00> : vector<32x32xf32>
    %11 = tpu.matmul %1, %10, %cst_11 {dimension_numbers = #tpu.dot_dimension_numbers<[1], [0], [0], [1], [0, 0, 1, 1], [], []>} : vector<32x32xf32>, vector<32x32xf32>, vector<32x32xf32> -> vector<32x32xf32>
    %cst_12 = arith.constant dense<0.000000e+00> : vector<32x32xf32>
    %12 = tpu.matmul %1, %11, %cst_12 {dimension_numbers = #tpu.dot_dimension_numbers<[1], [0], [0], [1], [0, 0, 1, 1], [], []>} : vector<32x32xf32>, vector<32x32xf32>, vector<32x32xf32> -> vector<32x32xf32>
    %13 = tpu.concatenate %10, %11, %12 in 0 : vector<32x32xf32>, vector<32x32xf32>, vector<32x32xf32> -> vector<96x32xf32>
    %c0_13 = arith.constant 0 : index
    %c0_14 = arith.constant 0 : index
    %14 = vector.load %arg9[%c0_13, %c0_14] : memref<32x32xf32, #tpu.memory_space<vmem>>, vector<32x32xf32>
    %cst_15 = arith.constant dense<0.000000e+00> : vector<96x32xf32>
    %15 = tpu.matmul %13, %14, %cst_15 {dimension_numbers = #tpu.dot_dimension_numbers<[1], [0], [0], [1], [0, 0, 1, 1], [], []>} : vector<96x32xf32>, vector<32x32xf32>, vector<96x32xf32> -> vector<96x32xf32>
    %16 = math.tanh %15 : vector<96x32xf32>
    %c0_16 = arith.constant 0 : index
    %c0_17 = arith.constant 0 : index
    %17 = vector.load %arg10[%c0_16, %c0_17] : memref<1x32xf32, #tpu.memory_space<vmem>>, vector<1x32xf32>
    %18 = vector.broadcast %17 : vector<1x32xf32> to vector<96x32xf32>
    %19 = arith.mulf %16, %18 : vector<96x32xf32>
    %cst_18 = arith.constant dense<0.000000e+00> : vector<96xf32>
    %20 = vector.multi_reduction <add>, %19, %cst_18 [1] : vector<96x32xf32> to vector<96xf32>
    %21 = vector.shape_cast %20 : vector<96xf32> to vector<96x1xf32>
    %22 = vector.extract_strided_slice %21 {offsets = [0, 0], sizes = [32, 1], strides = [1, 1]} : vector<96x1xf32> to vector<32x1xf32>
    %23 = vector.extract_strided_slice %21 {offsets = [32, 0], sizes = [32, 1], strides = [1, 1]} : vector<96x1xf32> to vector<32x1xf32>
    %24 = vector.extract_strided_slice %21 {offsets = [64, 0], sizes = [32, 1], strides = [1, 1]} : vector<96x1xf32> to vector<32x1xf32>
    %25 = arith.maximumf %22, %23 : vector<32x1xf32>
    %26 = arith.maximumf %25, %24 : vector<32x1xf32>
    %27 = arith.subf %22, %26 : vector<32x1xf32>
    %28 = math.exp %27 : vector<32x1xf32>
    %29 = arith.subf %23, %26 : vector<32x1xf32>
    %30 = math.exp %29 : vector<32x1xf32>
    %31 = arith.subf %24, %26 : vector<32x1xf32>
    %32 = math.exp %31 : vector<32x1xf32>
    %33 = arith.addf %28, %30 : vector<32x1xf32>
    %34 = arith.addf %33, %32 : vector<32x1xf32>
    %35 = tpu.reciprocal %34 {approx = true} : vector<32x1xf32> -> vector<32x1xf32>
    %36 = arith.mulf %28, %35 : vector<32x1xf32>
    %37 = vector.broadcast %36 : vector<32x1xf32> to vector<32x32xf32>
    %38 = arith.mulf %37, %10 : vector<32x32xf32>
    %39 = arith.mulf %30, %35 : vector<32x1xf32>
    %40 = vector.broadcast %39 : vector<32x1xf32> to vector<32x32xf32>
    %41 = arith.mulf %40, %11 : vector<32x32xf32>
    %42 = arith.addf %38, %41 : vector<32x32xf32>
    %43 = arith.mulf %32, %35 : vector<32x1xf32>
    %44 = vector.broadcast %43 : vector<32x1xf32> to vector<32x32xf32>
    %45 = arith.mulf %44, %12 : vector<32x32xf32>
    %46 = arith.addf %42, %45 : vector<32x32xf32>
    %c0_19 = arith.constant 0 : index
    %c0_20 = arith.constant 0 : index
    %c0_21 = arith.constant 0 : index
    %47 = vector.load %arg7[%c0_19, %c0_20, %c0_21] : memref<2x32x32xf32, #tpu.memory_space<vmem>>, vector<1x32x32xf32>
    %48 = vector.shape_cast %47 : vector<1x32x32xf32> to vector<32x32xf32>
    %cst_22 = arith.constant dense<0.000000e+00> : vector<32x32xf32>
    %49 = tpu.matmul %46, %48, %cst_22 {dimension_numbers = #tpu.dot_dimension_numbers<[1], [0], [0], [1], [0, 0, 1, 1], [], []>} : vector<32x32xf32>, vector<32x32xf32>, vector<32x32xf32> -> vector<32x32xf32>
    %c0_23 = arith.constant 0 : index
    %c0_24 = arith.constant 0 : index
    %c0_25 = arith.constant 0 : index
    %50 = vector.load %arg8[%c0_23, %c0_24, %c0_25] : memref<2x1x32xf32, #tpu.memory_space<vmem>>, vector<1x1x32xf32>
    %51 = vector.shape_cast %50 : vector<1x1x32xf32> to vector<1x32xf32>
    %52 = vector.broadcast %51 : vector<1x32xf32> to vector<32x32xf32>
    %53 = arith.addf %49, %52 : vector<32x32xf32>
    %cst_26 = arith.constant 0.000000e+00 : f32
    %54 = vector.broadcast %cst_26 : f32 to vector<32x32xf32>
    %55 = arith.maximumf %53, %54 : vector<32x32xf32>
    %56 = arith.addf %55, %9 : vector<32x32xf32>
    %cst_27 = arith.constant dense<0.000000e+00> : vector<32x32xf32>
    %57 = tpu.matmul %1, %56, %cst_27 {dimension_numbers = #tpu.dot_dimension_numbers<[1], [0], [0], [1], [0, 0, 1, 1], [], []>} : vector<32x32xf32>, vector<32x32xf32>, vector<32x32xf32> -> vector<32x32xf32>
    %cst_28 = arith.constant dense<0.000000e+00> : vector<32x32xf32>
    %58 = tpu.matmul %1, %57, %cst_28 {dimension_numbers = #tpu.dot_dimension_numbers<[1], [0], [0], [1], [0, 0, 1, 1], [], []>} : vector<32x32xf32>, vector<32x32xf32>, vector<32x32xf32> -> vector<32x32xf32>
    %cst_29 = arith.constant dense<0.000000e+00> : vector<32x32xf32>
    %59 = tpu.matmul %1, %58, %cst_29 {dimension_numbers = #tpu.dot_dimension_numbers<[1], [0], [0], [1], [0, 0, 1, 1], [], []>} : vector<32x32xf32>, vector<32x32xf32>, vector<32x32xf32> -> vector<32x32xf32>
    %60 = tpu.concatenate %57, %58, %59 in 0 : vector<32x32xf32>, vector<32x32xf32>, vector<32x32xf32> -> vector<96x32xf32>
    %c0_30 = arith.constant 0 : index
    %c0_31 = arith.constant 0 : index
    %61 = vector.load %arg9[%c0_30, %c0_31] : memref<32x32xf32, #tpu.memory_space<vmem>>, vector<32x32xf32>
    %cst_32 = arith.constant dense<0.000000e+00> : vector<96x32xf32>
    %62 = tpu.matmul %60, %61, %cst_32 {dimension_numbers = #tpu.dot_dimension_numbers<[1], [0], [0], [1], [0, 0, 1, 1], [], []>} : vector<96x32xf32>, vector<32x32xf32>, vector<96x32xf32> -> vector<96x32xf32>
    %63 = math.tanh %62 : vector<96x32xf32>
    %c0_33 = arith.constant 0 : index
    %c0_34 = arith.constant 0 : index
    %64 = vector.load %arg10[%c0_33, %c0_34] : memref<1x32xf32, #tpu.memory_space<vmem>>, vector<1x32xf32>
    %65 = vector.broadcast %64 : vector<1x32xf32> to vector<96x32xf32>
    %66 = arith.mulf %63, %65 : vector<96x32xf32>
    %cst_35 = arith.constant dense<0.000000e+00> : vector<96xf32>
    %67 = vector.multi_reduction <add>, %66, %cst_35 [1] : vector<96x32xf32> to vector<96xf32>
    %68 = vector.shape_cast %67 : vector<96xf32> to vector<96x1xf32>
    %69 = vector.extract_strided_slice %68 {offsets = [0, 0], sizes = [32, 1], strides = [1, 1]} : vector<96x1xf32> to vector<32x1xf32>
    %70 = vector.extract_strided_slice %68 {offsets = [32, 0], sizes = [32, 1], strides = [1, 1]} : vector<96x1xf32> to vector<32x1xf32>
    %71 = vector.extract_strided_slice %68 {offsets = [64, 0], sizes = [32, 1], strides = [1, 1]} : vector<96x1xf32> to vector<32x1xf32>
    %72 = arith.maximumf %69, %70 : vector<32x1xf32>
    %73 = arith.maximumf %72, %71 : vector<32x1xf32>
    %74 = arith.subf %69, %73 : vector<32x1xf32>
    %75 = math.exp %74 : vector<32x1xf32>
    %76 = arith.subf %70, %73 : vector<32x1xf32>
    %77 = math.exp %76 : vector<32x1xf32>
    %78 = arith.subf %71, %73 : vector<32x1xf32>
    %79 = math.exp %78 : vector<32x1xf32>
    %80 = arith.addf %75, %77 : vector<32x1xf32>
    %81 = arith.addf %80, %79 : vector<32x1xf32>
    %82 = tpu.reciprocal %81 {approx = true} : vector<32x1xf32> -> vector<32x1xf32>
    %83 = arith.mulf %75, %82 : vector<32x1xf32>
    %84 = vector.broadcast %83 : vector<32x1xf32> to vector<32x32xf32>
    %85 = arith.mulf %84, %57 : vector<32x32xf32>
    %86 = arith.mulf %77, %82 : vector<32x1xf32>
    %87 = vector.broadcast %86 : vector<32x1xf32> to vector<32x32xf32>
    %88 = arith.mulf %87, %58 : vector<32x32xf32>
    %89 = arith.addf %85, %88 : vector<32x32xf32>
    %90 = arith.mulf %79, %82 : vector<32x1xf32>
    %91 = vector.broadcast %90 : vector<32x1xf32> to vector<32x32xf32>
    %92 = arith.mulf %91, %59 : vector<32x32xf32>
    %93 = arith.addf %89, %92 : vector<32x32xf32>
    %c1 = arith.constant 1 : index
    %c0_36 = arith.constant 0 : index
    %c0_37 = arith.constant 0 : index
    %94 = vector.load %arg7[%c1, %c0_36, %c0_37] : memref<2x32x32xf32, #tpu.memory_space<vmem>>, vector<1x32x32xf32>
    %95 = vector.shape_cast %94 : vector<1x32x32xf32> to vector<32x32xf32>
    %cst_38 = arith.constant dense<0.000000e+00> : vector<32x32xf32>
    %96 = tpu.matmul %93, %95, %cst_38 {dimension_numbers = #tpu.dot_dimension_numbers<[1], [0], [0], [1], [0, 0, 1, 1], [], []>} : vector<32x32xf32>, vector<32x32xf32>, vector<32x32xf32> -> vector<32x32xf32>
    %c1_39 = arith.constant 1 : index
    %c0_40 = arith.constant 0 : index
    %c0_41 = arith.constant 0 : index
    %97 = vector.load %arg8[%c1_39, %c0_40, %c0_41] : memref<2x1x32xf32, #tpu.memory_space<vmem>>, vector<1x1x32xf32>
    %98 = vector.shape_cast %97 : vector<1x1x32xf32> to vector<1x32xf32>
    %99 = vector.broadcast %98 : vector<1x32xf32> to vector<32x32xf32>
    %100 = arith.addf %96, %99 : vector<32x32xf32>
    %cst_42 = arith.constant 0.000000e+00 : f32
    %101 = vector.broadcast %cst_42 : f32 to vector<32x32xf32>
    %102 = arith.maximumf %100, %101 : vector<32x32xf32>
    %c0_43 = arith.constant 0 : index
    %c0_44 = arith.constant 0 : index
    %103 = vector.load %arg11[%c0_43, %c0_44] : memref<32x128xf32, #tpu.memory_space<vmem>>, vector<32x128xf32>
    %cst_45 = arith.constant dense<0.000000e+00> : vector<32x128xf32>
    %104 = tpu.matmul %102, %103, %cst_45 {dimension_numbers = #tpu.dot_dimension_numbers<[1], [0], [0], [1], [0, 0, 1, 1], [], []>} : vector<32x32xf32>, vector<32x128xf32>, vector<32x128xf32> -> vector<32x128xf32>
    %105 = math.tanh %104 : vector<32x128xf32>
    %c0_46 = arith.constant 0 : index
    %c0_47 = arith.constant 0 : index
    %106 = vector.load %arg12[%c0_46, %c0_47] : memref<1x128xf32, #tpu.memory_space<vmem>>, vector<1x128xf32>
    %107 = vector.broadcast %106 : vector<1x128xf32> to vector<32x128xf32>
    %108 = arith.mulf %105, %107 : vector<32x128xf32>
    %109 = vector.extract_strided_slice %108 {offsets = [0, 0], sizes = [32, 32], strides = [1, 1]} : vector<32x128xf32> to vector<32x32xf32>
    %cst_48 = arith.constant dense<0.000000e+00> : vector<32xf32>
    %110 = vector.multi_reduction <add>, %109, %cst_48 [1] : vector<32x32xf32> to vector<32xf32>
    %111 = vector.shape_cast %110 : vector<32xf32> to vector<32x1xf32>
    %112 = vector.extract_strided_slice %108 {offsets = [0, 32], sizes = [32, 32], strides = [1, 1]} : vector<32x128xf32> to vector<32x32xf32>
    %cst_49 = arith.constant dense<0.000000e+00> : vector<32xf32>
    %113 = vector.multi_reduction <add>, %112, %cst_49 [1] : vector<32x32xf32> to vector<32xf32>
    %114 = vector.shape_cast %113 : vector<32xf32> to vector<32x1xf32>
    %115 = vector.extract_strided_slice %108 {offsets = [0, 64], sizes = [32, 32], strides = [1, 1]} : vector<32x128xf32> to vector<32x32xf32>
    %cst_50 = arith.constant dense<0.000000e+00> : vector<32xf32>
    %116 = vector.multi_reduction <add>, %115, %cst_50 [1] : vector<32x32xf32> to vector<32xf32>
    %117 = vector.shape_cast %116 : vector<32xf32> to vector<32x1xf32>
    %118 = vector.extract_strided_slice %108 {offsets = [0, 96], sizes = [32, 32], strides = [1, 1]} : vector<32x128xf32> to vector<32x32xf32>
    %cst_51 = arith.constant dense<0.000000e+00> : vector<32xf32>
    %119 = vector.multi_reduction <add>, %118, %cst_51 [1] : vector<32x32xf32> to vector<32xf32>
    %120 = vector.shape_cast %119 : vector<32xf32> to vector<32x1xf32>
    %121 = tpu.concatenate %111, %114, %117, %120 in 1 : vector<32x1xf32>, vector<32x1xf32>, vector<32x1xf32>, vector<32x1xf32> -> vector<32x4xf32>
    %122 = tpu.transpose %121, [1, 0] : vector<32x4xf32> -> vector<4x32xf32>
    %123 = tpu.concatenate %2, %2, %2, %2 in 0 : vector<2x32xf32>, vector<2x32xf32>, vector<2x32xf32>, vector<2x32xf32> -> vector<8x32xf32>
    %124 = vector.extract_strided_slice %122 {offsets = [0, 0], sizes = [1, 32], strides = [1, 1]} : vector<4x32xf32> to vector<1x32xf32>
    %125 = vector.shape_cast %124 : vector<1x32xf32> to vector<1x32xf32>
    %126 = vector.broadcast %125 : vector<1x32xf32> to vector<2x32xf32>
    %127 = vector.extract_strided_slice %122 {offsets = [1, 0], sizes = [1, 32], strides = [1, 1]} : vector<4x32xf32> to vector<1x32xf32>
    %128 = vector.shape_cast %127 : vector<1x32xf32> to vector<1x32xf32>
    %129 = vector.broadcast %128 : vector<1x32xf32> to vector<2x32xf32>
    %130 = vector.extract_strided_slice %122 {offsets = [2, 0], sizes = [1, 32], strides = [1, 1]} : vector<4x32xf32> to vector<1x32xf32>
    %131 = vector.shape_cast %130 : vector<1x32xf32> to vector<1x32xf32>
    %132 = vector.broadcast %131 : vector<1x32xf32> to vector<2x32xf32>
    %133 = vector.extract_strided_slice %122 {offsets = [3, 0], sizes = [1, 32], strides = [1, 1]} : vector<4x32xf32> to vector<1x32xf32>
    %134 = vector.shape_cast %133 : vector<1x32xf32> to vector<1x32xf32>
    %135 = vector.broadcast %134 : vector<1x32xf32> to vector<2x32xf32>
    %136 = tpu.concatenate %126, %129, %132, %135 in 0 : vector<2x32xf32>, vector<2x32xf32>, vector<2x32xf32>, vector<2x32xf32> -> vector<8x32xf32>
    %137 = arith.mulf %123, %136 : vector<8x32xf32>
    %cst_52 = arith.constant 1.000000e+00 : f32
    %138 = vector.broadcast %cst_52 : f32 to vector<8x32xf32>
    %139 = arith.subf %138, %123 : vector<8x32xf32>
    %cst_53 = arith.constant -1.000000e+30 : f32
    %140 = vector.broadcast %cst_53 : f32 to vector<8x32xf32>
    %141 = arith.mulf %139, %140 : vector<8x32xf32>
    %142 = arith.addf %137, %141 : vector<8x32xf32>
    %cst_54 = arith.constant dense<0xFF800000> : vector<8xf32>
    %143 = vector.multi_reduction <maximumf>, %142, %cst_54 [1] : vector<8x32xf32> to vector<8xf32>
    %144 = vector.shape_cast %143 : vector<8xf32> to vector<8x1xf32>
    %145 = vector.broadcast %144 : vector<8x1xf32> to vector<8x32xf32>
    %146 = arith.subf %142, %145 : vector<8x32xf32>
    %147 = math.exp %146 : vector<8x32xf32>
    %148 = arith.mulf %147, %123 : vector<8x32xf32>
    %cst_55 = arith.constant dense<0.000000e+00> : vector<8xf32>
    %149 = vector.multi_reduction <add>, %148, %cst_55 [1] : vector<8x32xf32> to vector<8xf32>
    %150 = vector.shape_cast %149 : vector<8xf32> to vector<8x1xf32>
    %151 = tpu.reciprocal %150 {approx = true} : vector<8x1xf32> -> vector<8x1xf32>
    %152 = vector.broadcast %151 : vector<8x1xf32> to vector<8x32xf32>
    %153 = arith.mulf %148, %152 : vector<8x32xf32>
    %cst_56 = arith.constant dense<0.000000e+00> : vector<8x32xf32>
    %154 = tpu.matmul %153, %102, %cst_56 {dimension_numbers = #tpu.dot_dimension_numbers<[1], [0], [0], [1], [0, 0, 1, 1], [], []>} : vector<8x32xf32>, vector<32x32xf32>, vector<8x32xf32> -> vector<8x32xf32>
    %155 = vector.extract_strided_slice %154 {offsets = [0, 0], sizes = [2, 32], strides = [1, 1]} : vector<8x32xf32> to vector<2x32xf32>
    %156 = vector.extract_strided_slice %154 {offsets = [2, 0], sizes = [2, 32], strides = [1, 1]} : vector<8x32xf32> to vector<2x32xf32>
    %157 = vector.extract_strided_slice %154 {offsets = [4, 0], sizes = [2, 32], strides = [1, 1]} : vector<8x32xf32> to vector<2x32xf32>
    %158 = vector.extract_strided_slice %154 {offsets = [6, 0], sizes = [2, 32], strides = [1, 1]} : vector<8x32xf32> to vector<2x32xf32>
    %159 = tpu.concatenate %155, %156, %157, %158 in 1 : vector<2x32xf32>, vector<2x32xf32>, vector<2x32xf32>, vector<2x32xf32> -> vector<2x128xf32>
    %c0_57 = arith.constant 0 : index
    %c0_58 = arith.constant 0 : index
    %160 = vector.load %arg13[%c0_57, %c0_58] : memref<128x32xf32, #tpu.memory_space<vmem>>, vector<128x32xf32>
    %cst_59 = arith.constant dense<0.000000e+00> : vector<2x32xf32>
    %161 = tpu.matmul %159, %160, %cst_59 {dimension_numbers = #tpu.dot_dimension_numbers<[1], [0], [0], [1], [0, 0, 1, 1], [], []>} : vector<2x128xf32>, vector<128x32xf32>, vector<2x32xf32> -> vector<2x32xf32>
    %c0_60 = arith.constant 0 : index
    %c0_61 = arith.constant 0 : index
    %162 = vector.load %arg14[%c0_60, %c0_61] : memref<1x32xf32, #tpu.memory_space<vmem>>, vector<1x32xf32>
    %163 = vector.broadcast %162 : vector<1x32xf32> to vector<2x32xf32>
    %164 = arith.addf %161, %163 : vector<2x32xf32>
    %cst_62 = arith.constant 0.000000e+00 : f32
    %165 = vector.broadcast %cst_62 : f32 to vector<2x32xf32>
    %166 = arith.maximumf %164, %165 : vector<2x32xf32>
    %c0_63 = arith.constant 0 : index
    %c0_64 = arith.constant 0 : index
    %167 = vector.load %arg15[%c0_63, %c0_64] : memref<32x8xf32, #tpu.memory_space<vmem>>, vector<32x8xf32>
    %cst_65 = arith.constant dense<0.000000e+00> : vector<2x8xf32>
    %168 = tpu.matmul %166, %167, %cst_65 {dimension_numbers = #tpu.dot_dimension_numbers<[1], [0], [0], [1], [0, 0, 1, 1], [], []>} : vector<2x32xf32>, vector<32x8xf32>, vector<2x8xf32> -> vector<2x8xf32>
    %c0_66 = arith.constant 0 : index
    %c0_67 = arith.constant 0 : index
    %169 = vector.load %arg16[%c0_66, %c0_67] : memref<1x8xf32, #tpu.memory_space<vmem>>, vector<1x8xf32>
    %170 = vector.broadcast %169 : vector<1x8xf32> to vector<2x8xf32>
    %171 = arith.addf %168, %170 : vector<2x8xf32>
    %cst_68 = arith.constant dense<0xFF800000> : vector<2xf32>
    %172 = vector.multi_reduction <maximumf>, %171, %cst_68 [1] : vector<2x8xf32> to vector<2xf32>
    %173 = vector.shape_cast %172 : vector<2xf32> to vector<2x1xf32>
    %174 = vector.broadcast %173 : vector<2x1xf32> to vector<2x8xf32>
    %175 = arith.subf %171, %174 : vector<2x8xf32>
    %176 = math.exp %175 : vector<2x8xf32>
    %cst_69 = arith.constant dense<0.000000e+00> : vector<2xf32>
    %177 = vector.multi_reduction <add>, %176, %cst_69 [1] : vector<2x8xf32> to vector<2xf32>
    %178 = vector.shape_cast %177 : vector<2xf32> to vector<2x1xf32>
    %179 = math.log %178 : vector<2x1xf32>
    %180 = vector.broadcast %179 : vector<2x1xf32> to vector<2x8xf32>
    %181 = arith.subf %175, %180 : vector<2x8xf32>
    %c0_70 = arith.constant 0 : index
    %c0_71 = arith.constant 0 : index
    %182 = vector.load %arg17[%c0_70, %c0_71] : memref<2x8xf32, #tpu.memory_space<vmem>>, vector<2x8xf32>
    tpu.vector_store %arg17[%c0_70, %c0_71], %181 {strides = array<i32>} : memref<2x8xf32, #tpu.memory_space<vmem>>, vector<2x8xf32>,
    %c0_72 = arith.constant 0 : index
    %c0_73 = arith.constant 0 : index
    %183 = vector.load %arg4[%c0_72, %c0_73] : memref<2x8xf32, #tpu.memory_space<vmem>>, vector<2x8xf32>
    %184 = arith.mulf %183, %181 : vector<2x8xf32>
    %185 = vector.shape_cast %184 : vector<2x8xf32> to vector<1x2x8xf32>
    %cst_74 = arith.constant dense<0.000000e+00> : vector<1xf32>
    %186 = vector.multi_reduction <add>, %185, %cst_74 [1, 2] : vector<1x2x8xf32> to vector<1xf32>
    %187 = vector.shape_cast %186 : vector<1xf32> to vector<1x1x1xf32>
    %188 = vector.extract %187[0, 0, 0] : f32 from vector<1x1x1xf32>
    %cst_75 = arith.constant 0.000000e+00 : f32
    %189 = arith.subf %cst_75, %188 : f32
    %cst_76 = arith.constant 2.000000e+00 : f32
    %190 = arith.divf %189, %cst_76 : f32
    %191 = vector.broadcast %190 : f32 to vector<1x1xf32>
    %c0_77 = arith.constant 0 : index
    %c0_78 = arith.constant 0 : index
    %192 = vector.load %arg18[%c0_77, %c0_78] : memref<1x1xf32, #tpu.memory_space<vmem>>, vector<1x1xf32>
    tpu.vector_store %arg18[%c0_77, %c0_78], %191 {strides = array<i32>} : memref<1x1xf32, #tpu.memory_space<vmem>>, vector<1x1xf32>,
    return
  }
  func.func @transform_0(%arg0: i32) -> (i32, i32) {
    %c0_i32 = arith.constant 0 : i32
    %c0_i32_0 = arith.constant 0 : i32
    %c0_i32_1 = arith.constant 0 : i32
    return %c0_i32, %c0_i32_0 : i32, i32
  }
  func.func @transform_1(%arg0: i32) -> (i32, i32) {
    %c0_i32 = arith.constant 0 : i32
    %c0_i32_0 = arith.constant 0 : i32
    %c0_i32_1 = arith.constant 0 : i32
    return %c0_i32, %c0_i32_0 : i32, i32
  }
  func.func @transform_2(%arg0: i32) -> (i32, i32) {
    %c0_i32 = arith.constant 0 : i32
    %c0_i32_0 = arith.constant 0 : i32
    %c0_i32_1 = arith.constant 0 : i32
    return %c0_i32, %c0_i32_0 : i32, i32
  }
  func.func @transform_3(%arg0: i32) -> (i32, i32) {
    %c0_i32 = arith.constant 0 : i32
    %c0_i32_0 = arith.constant 0 : i32
    %c0_i32_1 = arith.constant 0 : i32
    return %c0_i32, %c0_i32_0 : i32, i32
  }
  func.func @transform_4(%arg0: i32) -> (i32, i32) {
    %c0_i32 = arith.constant 0 : i32
    %c0_i32_0 = arith.constant 0 : i32
    %c0_i32_1 = arith.constant 0 : i32
    return %c0_i32, %c0_i32_0 : i32, i32
  }
  func.func @transform_5(%arg0: i32) -> (i32, i32) {
    %c0_i32 = arith.constant 0 : i32
    %c0_i32_0 = arith.constant 0 : i32
    %c0_i32_1 = arith.constant 0 : i32
    return %c0_i32, %c0_i32_0 : i32, i32
  }
  func.func @transform_6(%arg0: i32) -> (i32, i32, i32) {
    %c0_i32 = arith.constant 0 : i32
    %c0_i32_0 = arith.constant 0 : i32
    %c0_i32_1 = arith.constant 0 : i32
    %c0_i32_2 = arith.constant 0 : i32
    return %c0_i32, %c0_i32_0, %c0_i32_1 : i32, i32, i32
  }
  func.func @transform_7(%arg0: i32) -> (i32, i32, i32) {
    %c0_i32 = arith.constant 0 : i32
    %c0_i32_0 = arith.constant 0 : i32
    %c0_i32_1 = arith.constant 0 : i32
    %c0_i32_2 = arith.constant 0 : i32
    return %c0_i32, %c0_i32_0, %c0_i32_1 : i32, i32, i32
  }
  func.func @transform_8(%arg0: i32) -> (i32, i32) {
    %c0_i32 = arith.constant 0 : i32
    %c0_i32_0 = arith.constant 0 : i32
    %c0_i32_1 = arith.constant 0 : i32
    return %c0_i32, %c0_i32_0 : i32, i32
  }
  func.func @transform_9(%arg0: i32) -> (i32, i32) {
    %c0_i32 = arith.constant 0 : i32
    %c0_i32_0 = arith.constant 0 : i32
    %c0_i32_1 = arith.constant 0 : i32
    return %c0_i32, %c0_i32_0 : i32, i32
  }
  func.func @transform_10(%arg0: i32) -> (i32, i32) {
    %c0_i32 = arith.constant 0 : i32
    %c0_i32_0 = arith.constant 0 : i32
    %c0_i32_1 = arith.constant 0 : i32
    return %c0_i32, %c0_i32_0 : i32, i32
  }
  func.func @transform_11(%arg0: i32) -> (i32, i32) {
    %c0_i32 = arith.constant 0 : i32
    %c0_i32_0 = arith.constant 0 : i32
    %c0_i32_1 = arith.constant 0 : i32
    return %c0_i32, %c0_i32_0 : i32, i32
  }
  func.func @transform_12(%arg0: i32) -> (i32, i32) {
    %c0_i32 = arith.constant 0 : i32
    %c0_i32_0 = arith.constant 0 : i32
    %c0_i32_1 = arith.constant 0 : i32
    return %c0_i32, %c0_i32_0 : i32, i32
  }
  func.func @transform_13(%arg0: i32) -> (i32, i32) {
    %c0_i32 = arith.constant 0 : i32
    %c0_i32_0 = arith.constant 0 : i32
    %c0_i32_1 = arith.constant 0 : i32
    return %c0_i32, %c0_i32_0 : i32, i32
  }
  func.func @transform_14(%arg0: i32) -> (i32, i32) {
    %c0_i32 = arith.constant 0 : i32
    %c0_i32_0 = arith.constant 0 : i32
    %c0_i32_1 = arith.constant 0 : i32
    return %c0_i32, %c0_i32_0 : i32, i32
  }
  func.func @transform_15(%arg0: i32) -> (i32, i32) {
    %c0_i32 = arith.constant 0 : i32
    %c0_i32_0 = arith.constant 0 : i32
    %c0_i32_1 = arith.constant 0 : i32
    return %c0_i32, %c0_i32_0 : i32, i32
  }
  func.func @transform_16(%arg0: i32) -> (i32, i32) {
    %c0_i32 = arith.constant 0 : i32
    %c0_i32_0 = arith.constant 0 : i32
    %c0_i32_1 = arith.constant 0 : i32
    return %c0_i32, %c0_i32_0 : i32, i32
  }
  func.func @transform_17(%arg0: i32) -> (i32, i32) {
    %c0_i32 = arith.constant 0 : i32
    %c0_i32_0 = arith.constant 0 : i32
    %c0_i32_1 = arith.constant 0 : i32
    return %c0_i32, %c0_i32_0 : i32, i32
  }
}

</mosaic_0001>

<bundles_post_ra>
// kernel: squeeze.1
= control target key start
LH: loop header
LB: loop body
LE: loop exit
PB: predicated region body
PF: predicated region fallthrough
CT: control target
= control target key end

     0   :  { %vm8_vm0 = vcmask 261120   ;;  %s40_s8 = smov 32   ;;  %s41_s9 = smov 64   ;;  %vm14_vm1 = vcmask 1048320   ;;  %vm20_vm2 = vcmask 785920   ;;  %vm26_vm3 = vcmask 523520   ;;  %s58_s0 = inlined_call_operand.vmem [shape: f32[4,32], index: 0, kind: input, shape index: {}]   ;;  %s59_s1 = inlined_call_operand.vmem [shape: f32[1,128], index: 1, kind: output, shape index: {}]  }
   0x1   :  { %v5_v0 = vld [vmem:[%s58_s0] sm:$0xf]  ;;  %s39_s0 = smov 96  }
   0x2   :  { %6 = vst [vmem:[#allocation1] sm:$0xf] %v5_v0 }
   0x9   :  { %v11_v1 = vld [vmem:[#allocation1 + $0x3] sm:$0x1]   ;;  %v23_v2 = vld [vmem:[#allocation1 + $0x1] sm:$0x1]   ;;  %v7_v3 = vld [vmem:[#allocation1] sm:$0x1]  }
   0xa   :  { %12 = vrot.lane.b32.xlu0 %v11_v1, %s39_s0  ;;  %24 = vrot.lane.b32.xlu1 %v23_v2, %s40_s8  ;;  %v17_v4 = vld [vmem:[#allocation1 + $0x2] sm:$0x1]   ;;  %9 = vst.msk [vmem:[#allocation0] sm:$0x1] %vm8_vm0, %v7_v3  }
   0xe   :  { %18 = vrot.lane.b32.xlu0 %v17_v4, %s41_s9 }
  0x7c   :  { %v13_v5 = vpop.permute.xlu0 %12   ;;  %v25_v6 = vpop.permute.xlu1 %24  }
  0x7d   :  { %15 = vst.msk [vmem:[#allocation0] sm:$0x1] %vm14_vm1, %v13_v5  }
  0x80   :  { %v19_v7 = vpop.permute.xlu0 %18  }
  0x81   :  { %21 = vst.msk [vmem:[#allocation0] sm:$0x1] %vm20_vm2, %v19_v7  }
  0x82   :  { %27 = vst.msk [vmem:[#allocation0] sm:$0x1] %vm26_vm3, %v25_v6  }
  0x89   :  { %v32_v8 = vld [vmem:[#allocation0] sm:$0x1] }
  0x8a   :  { %35 = vst [vmem:[%s59_s1] sm:$0x1] %v32_v8 }

// kernel: classifier_forward.1
= control target key start
LH: loop header
LB: loop body
LE: loop exit
PB: predicated region body
PF: predicated region fallthrough
CT: control target
= control target key end

     0   :  { %s3494_s0 = inlined_call_operand.vmem [shape: f32[32,16], index: 0, kind: input, shape index: {}]   ;;  %s3495_s1 = inlined_call_operand.vmem [shape: f32[32,32], index: 1, kind: input, shape index: {}]   ;;  %s3496_s2 = inlined_call_operand.vmem [shape: f32[2,32], index: 2, kind: input, shape index: {}]   ;;  %s3497_s3 = inlined_call_operand.vmem [shape: f32[2,8], index: 3, kind: input, shape index: {}]   ;;  %s3498_s4 = inlined_call_operand.vmem [shape: f32[16,32], index: 4, kind: input, shape index: {}]   ;;  %s3499_s5 = inlined_call_operand.vmem [shape: f32[1,32], index: 5, kind: input, shape index: {}]   ;;  %s3500_s6 = inlined_call_operand.vmem [shape: f32[2,32,32], index: 6, kind: input, shape index: {}]   ;;  %s3501_s7 = inlined_call_operand.vmem [shape: f32[2,1,32], index: 7, kind: input, shape index: {}]   ;;  %s3502_s8 = inlined_call_operand.vmem [shape: f32[32,32], index: 8, kind: input, shape index: {}]   ;;  %s3503_s9 = inlined_call_operand.vmem [shape: f32[1,32], index: 9, kind: input, shape index: {}]   ;;  %s3504_s10 = inlined_call_operand.vmem [shape: f32[32,128], index: 10, kind: input, shape index: {}]   ;;  %s3505_s11 = inlined_call_operand.vmem [shape: f32[1,128], index: 11, kind: input, shape index: {}]   ;;  %s3506_s12 = inlined_call_operand.vmem [shape: f32[128,32], index: 12, kind: input, shape index: {}]   ;;  %s3507_s13 = inlined_call_operand.vmem [shape: f32[1,32], index: 13, kind: input, shape index: {}]   ;;  %s3508_s14 = inlined_call_operand.vmem [shape: f32[32,8], index: 14, kind: input, shape index: {}]   ;;  %s3509_s15 = inlined_call_operand.vmem [shape: f32[1,8], index: 15, kind: input, shape index: {}]   ;;  %s3510_s16 = inlined_call_operand.hbm [shape: f32[2,8], index: 16, kind: output, shape index: {0}]   ;;  %s3511_s17 = inlined_call_operand.hbm [shape: f32[1,1], index: 17, kind: output, shape index: {1}]  }
   0x1   :  { %3514 = sst [smem:[#allocation8_spill]] %s3494_s0 }
   0x2   :  { %3515 = sst [smem:[#allocation9_spill]] %s3495_s1 }
   0x3   :  { %23 = vsyncpa [#allocation3], 0  ;;  %v67_v0 = vld [vmem:[%s3498_s4 + $0x8] sm:$0xff]  ;;  %v66_v1 = vld [vmem:[%s3498_s4] sm:$0xff]  ;;  %s3516_s0 = sld [smem:[#allocation8_spill]]  ;;  %vm75_vm0 = vcmask 130048  }
   0x4   :  { %2403 = vmatprep.subr.mxu0 %v67_v0 }
   0x5   :  { %2404 = vmatpush3.msra.mxu0 %v67_v0 }
   0x9   :  { %v57_v2 = vld [vmem:[%s3516_s0] sm:$0xff]  ;;  %v58_v3 = vld [vmem:[%s3516_s0 + $0x8] sm:$0xff] }
   0xa   :  { %2407 = vmatprep.mubr.msk.f32.mxu0 %vm75_vm0, %v57_v2 }
   0xb   :  { %24 = vsyncpa [#allocation5], 0  ;;  %2405 = vmatprep.subr.mxu0 %v66_v1  ;;  %v59_v4 = vld [vmem:[%s3516_s0 + $0x10] sm:$0xff]  ;;  %v60_v5 = vld [vmem:[%s3516_s0 + $0x18] sm:$0xff]  ;;  %s3517_s23 = sld [smem:[#allocation9_spill]]  ;;  %vm177_vm1 = vcmask 261120  }
   0xc   :  { %2406 = vmatpush3.msra.mxu0 %v66_v1  ;;  %v2188_v9 = vld [vmem:[%s3499_s5] ss:$0 sm:$0xff]  ;;  %v3012_v27 = vld [vmem:[%s3502_s8 + $0x18] sm:$0xff]  ;;  %v3019_v28 = vld [vmem:[%s3502_s8 + $0x10] sm:$0xff]  ;;  %s2830_s0 = smov 64   ;;  %s2831_s30 = smov 96  }
   0xd   :  { %2408 = vmatmul.mubr.msk.f32.vlgmr.msra.gmra.mxu0 %vm75_vm0, %v58_v3  ;;  %v3030_v29 = vld [vmem:[%s3502_s8 + $0x8] sm:$0xff]  ;;  %v3037_v30 = vld [vmem:[%s3502_s8] sm:$0xff]  ;;  %s2832_s18 = smov 32   ;;  %vm1763_vm2 = vcmask 7168   ;;  %vm1768_vm3 = vcmask 15360   ;;  %vm1773_vm4 = vcmask 23552  }
   0xe   :  { %2410 = vmatprep.mubr.msk.f32.mxu0 %vm75_vm0, %v59_v4  ;;  %v3086_v39 = vld [vmem:[%s3503_s9] ss:$0 sm:$0xff]  ;;  %vm1817_vm5 = vcmask 1041408   ;;  %vm1819_vm6 = vcmask 1043456   ;;  %vm1821_vm7 = vcmask 1045504   ;;  %vm2833_vm8 = vmmov 0  }
   0xf   :  { %vm1945_vm9 = vcmask 523264   ;;  %vm1947_vm10 = vcmask 785408   ;;  %vm2127_vm11 = vcmask 58368  }
  0x11   :  { %2411 = vmatmul.mubr.msk.f32.gmra.mxu0 %vm75_vm0, %v60_v5  ;;  %v2947_v6 = vld [vmem:[%s3517_s23] sm:$0xff]  ;;  %v2973_v20 = vld [vmem:[%s3517_s23 + $0x8] sm:$0xff]  ;;  %v2979_v21 = vld [vmem:[%s3517_s23 + $0x10] sm:$0xff] }
  0x12   :  { %2421 = vmatprep.mubr.msk.f32.mxu1 %vm177_vm1, %v2947_v6  ;;  %2435 = vmatprep.mubr.msk.f32.mxu0 %vm177_vm1, %v2947_v6  ;;  %v2989_v22 = vld [vmem:[%s3517_s23 + $0x18] sm:$0xff] }
  0xcd   :  { %v2409_v7 = vpop.f32.mrf.mxu0 }
  0xce   :  { %v160_v13 = vadd.f32 %v2409_v7, %v2188_v9 }
  0xcf   :  { %v154_v8 = vpop.f32.mrf.mxu0 }
  0xd0   :  { %v155_v16 = vadd.f32 %v2188_v9, %v154_v8  ;;  %v2962_v18 = vmax.f32 %v160_v13, 0.0 }
  0xd1   :  { %v2412_v10 = vpop.f32.mrf.mxu0 }
  0xd2   :  { %v170_v11 = vadd.f32 %v2412_v10, %v2188_v9  ;;  %v2966_v19 = vmax.f32 %v155_v16, 0.0 }
  0xd3   :  { %v164_v12 = vpop.f32.mrf.mxu0 }
  0xd4   :  { %v2956_v14 = vmax.f32 %v170_v11, 0.0  ;;  %v165_v15 = vadd.f32 %v2188_v9, %v164_v12 }
  0xd6   :  { %v2958_v17 = vmax.f32 %v165_v15, 0.0  ;;  %2413 = vmatprep.subr.mxu1 %v2956_v14 }
  0xd7   :  { %2414 = vmatpush3.msra.mxu1 %v2956_v14 }
  0xd8   :  { %2415 = vmatprep.subr.mxu1 %v2958_v17 }
  0xd9   :  { %2416 = vmatpush3.msra.mxu1 %v2958_v17 }
  0xda   :  { %2417 = vmatprep.subr.mxu1 %v2962_v18 }
  0xdb   :  { %2418 = vmatpush3.msra.mxu1 %v2962_v18 }
  0xdc   :  { %2419 = vmatprep.subr.mxu1 %v2966_v19 }
  0xdd   :  { %2420 = vmatpush3.msra.mxu1 %v2966_v19 }
  0xde   :  { %2422 = vmatmul.mubr.msk.f32.vlgmr.msra.gmra.mxu1 %vm177_vm1, %v2973_v20 }
  0xdf   :  { %2424 = vmatprep.mubr.msk.f32.mxu1 %vm177_vm1, %v2979_v21 }
  0xe2   :  { %2425 = vmatmul.mubr.msk.f32.gmra.mxu1 %vm177_vm1, %v2989_v22 }
  0xe3   :  { %2449 = vmatprep.mubr.msk.f32.mxu1 %vm177_vm1, %v2947_v6 }
 0x19e   :  { %v2995_v23 = vpop.f32.mrf.mxu1 }
 0x1a0   :  { %v2997_v24 = vpop.f32.mrf.mxu1 }
 0x1a2   :  { %v2999_v25 = vpop.f32.mrf.mxu1 }
 0x1a3   :  { %2427 = vmatprep.subr.mxu0 %v2999_v25 }
 0x1a4   :  { %v3002_v26 = vpop.f32.mrf.mxu1  ;;  %2428 = vmatpush3.msra.mxu0 %v2999_v25 }
 0x1a5   :  { %2429 = vmatprep.subr.mxu0 %v3002_v26 }
 0x1a6   :  { %2430 = vmatpush3.msra.mxu0 %v3002_v26 }
 0x1a7   :  { %2431 = vmatprep.subr.mxu0 %v2995_v23 }
 0x1a8   :  { %2432 = vmatpush3.msra.mxu0 %v2995_v23 }
 0x1a9   :  { %2433 = vmatprep.subr.mxu0 %v2997_v24 }
 0x1aa   :  { %2434 = vmatpush3.msra.mxu0 %v2997_v24 }
 0x1ab   :  { %2436 = vmatmul.mubr.msk.f32.vlgmr.msra.gmra.mxu0 %vm177_vm1, %v2973_v20  ;;  %2455 = vmatprep.subr.mxu0 %v3012_v27 }
 0x1ac   :  { %2456 = vmatpush3.msra.mxu0 %v3012_v27  ;;  %2438 = vmatprep.mubr.msk.f32.mxu0 %vm177_vm1, %v2979_v21 }
 0x1ad   :  { %2457 = vmatprep.subr.mxu0 %v3019_v28 }
 0x1ae   :  { %2458 = vmatpush3.msra.mxu0 %v3019_v28 }
 0x1af   :  { %2439 = vmatmul.mubr.msk.f32.gmra.mxu0 %vm177_vm1, %v2989_v22  ;;  %2459 = vmatprep.subr.mxu0 %v3030_v29 }
 0x1b0   :  { %2460 = vmatpush3.msra.mxu0 %v3030_v29  ;;  %2463 = vmatprep.mubr.msk.f32.mxu0 %vm177_vm1, %v2997_v24 }
 0x1b1   :  { %2461 = vmatprep.subr.mxu0 %v3037_v30 }
 0x1b2   :  { %2462 = vmatpush3.msra.mxu0 %v3037_v30 }
 0x1b3   :  { %2464 = vmatmul.mubr.msk.f32.vlgmr.msra.gmra.mxu0 %vm177_vm1, %v2995_v23 }
 0x1b4   :  { %2466 = vmatprep.mubr.msk.f32.mxu0 %vm177_vm1, %v3002_v26 }
 0x1b7   :  { %2467 = vmatmul.mubr.msk.f32.gmra.mxu0 %vm177_vm1, %v2999_v25 }
 0x26b   :  { %v3053_v31 = vpop.f32.mrf.mxu0 }
 0x26d   :  { %v3055_v32 = vpop.f32.mrf.mxu0 }
 0x26e   :  { %2469 = vmatprep.mubr.msk.f32.mxu0 %vm177_vm1, %v3055_v32 }
 0x26f   :  { %v3059_v33 = vpop.f32.mrf.mxu0  ;;  %2470 = vmatmul.mubr.msk.f32.gmra.mxu0 %vm177_vm1, %v3053_v31 }
 0x270   :  { %2441 = vmatprep.subr.mxu1 %v3059_v33 }
 0x271   :  { %v3064_v34 = vpop.f32.mrf.mxu0  ;;  %2442 = vmatpush3.msra.mxu1 %v3059_v33 }
 0x272   :  { %2443 = vmatprep.subr.mxu1 %v3064_v34  ;;  %2472 = vmatprep.mubr.msk.f32.mxu0 %vm177_vm1, %v3064_v34 }
 0x273   :  { %2444 = vmatpush3.msra.mxu1 %v3064_v34  ;;  %v2465_v35 = vpop.f32.mrf.mxu0  ;;  %2473 = vmatmul.mubr.msk.f32.gmra.mxu0 %vm177_vm1, %v3059_v33 }
 0x274   :  { %2657 = vtanh.f32 %v2465_v35  ;;  %2445 = vmatprep.subr.mxu1 %v3053_v31 }
 0x275   :  { %2446 = vmatpush3.msra.mxu1 %v3053_v31  ;;  %v551_v36 = vpop.f32.mrf.mxu0 }
 0x276   :  { %2659 = vtanh.f32 %v551_v36  ;;  %2447 = vmatprep.subr.mxu1 %v3055_v32 }
 0x277   :  { %2448 = vmatpush3.msra.mxu1 %v3055_v32  ;;  %v2468_v37 = vpop.f32.mrf.mxu0 }
 0x278   :  { %2661 = vtanh.f32 %v2468_v37  ;;  %2450 = vmatmul.mubr.msk.f32.vlgmr.msra.gmra.mxu1 %vm177_vm1, %v2973_v20 }
 0x279   :  { %v561_v38 = vpop.f32.mrf.mxu0  ;;  %2452 = vmatprep.mubr.msk.f32.mxu1 %vm177_vm1, %v2979_v21 }
 0x27a   :  { %2663 = vtanh.f32 %v561_v38 }
 0x27c   :  { %2453 = vmatmul.mubr.msk.f32.gmra.mxu1 %vm177_vm1, %v2989_v22 }
 0x281   :  { %v2658_v40 = vpop.eup %2657 }
 0x282   :  { %v630_v41 = vmul.f32 %v2658_v40, %v3086_v39 }
 0x283   :  { %v2660_v42 = vpop.eup %2659 }
 0x284   :  { %v644_v43 = vsel %vm177_vm1, %v630_v41, 0.0  ;;  %v629_v44 = vmul.f32 %v2660_v42, %v3086_v39 }
 0x285   :  { %v2662_v45 = vpop.eup %2661  ;;  %645 = vadd.xlane.f32.xlu1 %v644_v43 }
 0x286   :  { %v641_v46 = vsel %vm177_vm1, %v629_v44, 0.0  ;;  %v632_v47 = vmul.f32 %v2662_v45, %v3086_v39  ;;  %v768_v45 = vld [vmem:[%s3500_s6 + $0x18] sm:$0xff] }
 0x287   :  { %v2664_v48 = vpop.eup %2663  ;;  %642 = vadd.xlane.f32.xlu0 %v641_v46  ;;  %v767_v46 = vld [vmem:[%s3500_s6 + $0x10] sm:$0xff]  ;;  %2481 = vmatprep.subr.mxu1 %v768_v45 }
 0x288   :  { %v650_v49 = vsel %vm177_vm1, %v632_v47, 0.0  ;;  %v631_v50 = vmul.f32 %v2664_v48, %v3086_v39  ;;  %2482 = vmatpush3.msra.mxu1 %v768_v45  ;;  %v766_v47 = vld [vmem:[%s3500_s6 + $0x8] sm:$0xff]  ;;  %v765_v48 = vld [vmem:[%s3500_s6] sm:$0xff] }
 0x289   :  { %2483 = vmatprep.subr.mxu1 %v767_v46 }
 0x28a   :  { %v647_v51 = vsel %vm177_vm1, %v631_v50, 0.0  ;;  %2484 = vmatpush3.msra.mxu1 %v767_v46 }
 0x28b   :  { %651 = vadd.xlane.f32.xlu0 %v650_v49  ;;  %2485 = vmatprep.subr.mxu1 %v766_v47 }
 0x28c   :  { %2486 = vmatpush3.msra.mxu1 %v766_v47 }
 0x28d   :  { %2487 = vmatprep.subr.mxu1 %v765_v48 }
 0x28e   :  { %2488 = vmatpush3.msra.mxu1 %v765_v48 }
 0x28f   :  { %648 = vadd.xlane.f32.xlu0 %v647_v51 }
 0x30e   :  { %v646_v49 = vpop.xlane.xlu1 %645 }
 0x310   :  { %v643_v50 = vpop.xlane.xlu0 %642 }
 0x32f   :  { %v2471_v52 = vpop.f32.mrf.mxu0 }
 0x330   :  { %2665 = vtanh.f32 %v2471_v52  ;;  %v652_v52 = vpop.xlane.xlu0 %651 }
 0x331   :  { %v571_v53 = vpop.f32.mrf.mxu0 }
 0x332   :  { %2667 = vtanh.f32 %v571_v53 }
 0x333   :  { %v2474_v54 = vpop.f32.mrf.mxu0 }
 0x334   :  { %2669 = vtanh.f32 %v2474_v54  ;;  %v649_v54 = vpop.xlane.xlu0 %648 }
 0x335   :  { %v581_v55 = vpop.f32.mrf.mxu0 }
 0x336   :  { %2671 = vtanh.f32 %v581_v55 }
 0x338   :  { %v3096_v56 = vpop.f32.mrf.mxu1 }
 0x33a   :  { %v3098_v57 = vpop.f32.mrf.mxu1 }
 0x33b   :  { %2475 = vmatprep.mubr.msk.f32.mxu0 %vm177_vm1, %v3098_v57 }
 0x33c   :  { %v3102_v58 = vpop.f32.mrf.mxu1  ;;  %2476 = vmatmul.mubr.msk.f32.gmra.mxu0 %vm177_vm1, %v3096_v56 }
 0x33d   :  { %v2666_v59 = vpop.eup %2665 }
 0x33e   :  { %v3106_v60 = vpop.f32.mrf.mxu1  ;;  %v634_v61 = vmul.f32 %v2666_v59, %v3086_v39 }
 0x33f   :  { %v2668_v62 = vpop.eup %2667  ;;  %2478 = vmatprep.mubr.msk.f32.mxu0 %vm177_vm1, %v3106_v60 }
 0x340   :  { %2479 = vmatmul.mubr.msk.f32.gmra.mxu0 %vm177_vm1, %v3102_v58  ;;  %v656_v63 = vsel %vm177_vm1, %v634_v61, 0.0  ;;  %v633_v0 = vmul.f32 %v2668_v62, %v3086_v39 }
 0x341   :  { %v2670_v1 = vpop.eup %2669  ;;  %657 = vadd.xlane.f32.xlu1 %v656_v63  ;;  %2531 = vmatprep.mubr.msk.f32.mxu0 %vm177_vm1, %v2947_v6 }
 0x342   :  { %v653_v2 = vsel %vm177_vm1, %v633_v0, 0.0  ;;  %v636_v3 = vmul.f32 %v2670_v1, %v3086_v39 }
 0x343   :  { %v2672_v4 = vpop.eup %2671  ;;  %654 = vadd.xlane.f32.xlu0 %v653_v2 }
 0x344   :  { %v662_v5 = vsel %vm177_vm1, %v636_v3, 0.0  ;;  %v635_v7 = vmul.f32 %v2672_v4, %v3086_v39 }
 0x345   :  { %663 = vadd.xlane.f32.xlu1 %v662_v5 }
 0x346   :  { %v659_v8 = vsel %vm177_vm1, %v635_v7, 0.0 }
 0x349   :  { %660 = vadd.xlane.f32.xlu1 %v659_v8 }
 0x3ca   :  { %v658_v51 = vpop.xlane.xlu1 %657 }
 0x3cb   :  { %v678_v61 = vmax.f32 %v646_v49, %v658_v51 }
 0x3cc   :  { %v655_v59 = vpop.xlane.xlu0 %654 }
 0x3cd   :  { %v677_v63 = vmax.f32 %v643_v50, %v655_v59 }
 0x3ce   :  { %v664_v53 = vpop.xlane.xlu1 %663 }
 0x3cf   :  { %v680_v7 = vmax.f32 %v652_v52, %v664_v53 }
 0x3d2   :  { %v661_v55 = vpop.xlane.xlu1 %660 }
 0x3d3   :  { %v679_v8 = vmax.f32 %v649_v54, %v661_v55 }
 0x3fc   :  { %v2477_v9 = vpop.f32.mrf.mxu0 }
 0x3fd   :  { %2673 = vtanh.f32 %v2477_v9 }
 0x3fe   :  { %v591_v10 = vpop.f32.mrf.mxu0 }
 0x3ff   :  { %2675 = vtanh.f32 %v591_v10 }
 0x400   :  { %v2480_v11 = vpop.f32.mrf.mxu0 }
 0x401   :  { %2677 = vtanh.f32 %v2480_v11 }
 0x402   :  { %v601_v12 = vpop.f32.mrf.mxu0 }
 0x403   :  { %2679 = vtanh.f32 %v601_v12 }
 0x40a   :  { %v2674_v13 = vpop.eup %2673 }
 0x40b   :  { %v638_v15 = vmul.f32 %v2674_v13, %v3086_v39 }
 0x40c   :  { %v2676_v16 = vpop.eup %2675 }
 0x40d   :  { %v668_v35 = vsel %vm177_vm1, %v638_v15, 0.0  ;;  %v637_v36 = vmul.f32 %v2676_v16, %v3086_v39 }
 0x40e   :  { %v2678_v37 = vpop.eup %2677  ;;  %669 = vadd.xlane.f32.xlu1 %v668_v35 }
 0x40f   :  { %v665_v38 = vsel %vm177_vm1, %v637_v36, 0.0  ;;  %v640_v40 = vmul.f32 %v2678_v37, %v3086_v39 }
 0x410   :  { %v2680_v41 = vpop.eup %2679  ;;  %666 = vadd.xlane.f32.xlu0 %v665_v38 }
 0x411   :  { %v674_v42 = vsel %vm177_vm1, %v640_v40, 0.0  ;;  %v639_v43 = vmul.f32 %v2680_v41, %v3086_v39 }
 0x412   :  { %675 = vadd.xlane.f32.xlu1 %v674_v42 }
 0x413   :  { %v671_v44 = vsel %vm177_vm1, %v639_v43, 0.0 }
 0x414   :  { %672 = vadd.xlane.f32.xlu0 %v671_v44 }
 0x497   :  { %v670_v62 = vpop.xlane.xlu1 %669 }
 0x498   :  { %v682_v0 = vmax.f32 %v678_v61, %v670_v62 }
 0x499   :  { %v667_v1 = vpop.xlane.xlu0 %666 }
 0x49a   :  { %v686_v2 = vsub.f32 %v646_v49, %v682_v0  ;;  %v698_v3 = vsub.f32 %v658_v51, %v682_v0  ;;  %v710_v4 = vsub.f32 %v670_v62, %v682_v0  ;;  %v681_v5 = vmax.f32 %v677_v63, %v667_v1 }
 0x49b   :  { %v676_v9 = vpop.xlane.xlu1 %675 }
 0x49c   :  { %v691_v10 = vmul.f32 1.442695, %v686_v2  ;;  %v703_v11 = vmul.f32 1.442695, %v698_v3  ;;  %v715_v12 = vmul.f32 1.442695, %v710_v4  ;;  %v685_v13 = vsub.f32 %v643_v50, %v681_v5 }
 0x49d   :  { %v697_v15 = vsub.f32 %v655_v59, %v681_v5  ;;  %v709_v16 = vsub.f32 %v667_v1, %v681_v5  ;;  %v684_v35 = vmax.f32 %v680_v7, %v676_v9  ;;  %v673_v36 = vpop.xlane.xlu0 %672 }
 0x49e   :  { %2681 = vpow2.f32 %v691_v10  ;;  %v689_v37 = vmul.f32 1.442695, %v685_v13  ;;  %v683_v38 = vmax.f32 %v679_v8, %v673_v36 }
 0x49f   :  { %2683 = vpow2.f32 %v703_v11  ;;  %v701_v40 = vmul.f32 1.442695, %v697_v15  ;;  %v713_v41 = vmul.f32 1.442695, %v709_v16  ;;  %v688_v42 = vsub.f32 %v652_v52, %v684_v35 }
 0x4a0   :  { %2685 = vpow2.f32 %v715_v12  ;;  %v700_v43 = vsub.f32 %v664_v53, %v684_v35  ;;  %v712_v44 = vsub.f32 %v676_v9, %v684_v35  ;;  %v687_v45 = vsub.f32 %v649_v54, %v683_v38 }
 0x4a1   :  { %2687 = vpow2.f32 %v689_v37  ;;  %v695_v46 = vmul.f32 1.442695, %v688_v42  ;;  %v699_v47 = vsub.f32 %v661_v55, %v683_v38  ;;  %v711_v50 = vsub.f32 %v673_v36, %v683_v38 }
 0x4a2   :  { %2689 = vpow2.f32 %v701_v40  ;;  %v707_v48 = vmul.f32 1.442695, %v700_v43  ;;  %v719_v49 = vmul.f32 1.442695, %v712_v44  ;;  %v693_v51 = vmul.f32 1.442695, %v687_v45 }
 0x4a3   :  { %2691 = vpow2.f32 %v713_v41  ;;  %v705_v59 = vmul.f32 1.442695, %v699_v47  ;;  %v717_v61 = vmul.f32 1.442695, %v711_v50 }
 0x4a4   :  { %2693 = vpow2.f32 %v695_v46 }
 0x4a5   :  { %2695 = vpow2.f32 %v707_v48 }
 0x4a6   :  { %2697 = vpow2.f32 %v719_v49 }
 0x4a7   :  { %2699 = vpow2.f32 %v693_v51 }
 0x4a8   :  { %2701 = vpow2.f32 %v705_v59 }
 0x4a9   :  { %2703 = vpow2.f32 %v717_v61 }
 0x4ab   :  { %v2682_v52 = vpop.eup %2681 }
 0x4ac   :  { %v2684_v53 = vpop.eup %2683 }
 0x4ad   :  { %v2686_v54 = vpop.eup %2685  ;;  %v722_v62 = vadd.f32 %v2684_v53, %v2682_v52 }
 0x4ae   :  { %v2688_v63 = vpop.eup %2687 }
 0x4af   :  { %v2690_v55 = vpop.eup %2689  ;;  %v726_v0 = vadd.f32 %v2686_v54, %v722_v62 }
 0x4b0   :  { %v2692_v1 = vpop.eup %2691  ;;  %v721_v2 = vadd.f32 %v2690_v55, %v2688_v63 }
 0x4b1   :  { %v2694_v3 = vpop.eup %2693  ;;  %2705 = vrcp.f32 %v726_v0 }
 0x4b2   :  { %v2696_v4 = vpop.eup %2695  ;;  %v725_v5 = vadd.f32 %v2692_v1, %v721_v2 }
 0x4b3   :  { %v2698_v7 = vpop.eup %2697  ;;  %v724_v8 = vadd.f32 %v2696_v4, %v2694_v3 }
 0x4b4   :  { %v2700_v9 = vpop.eup %2699  ;;  %2707 = vrcp.f32 %v725_v5 }
 0x4b5   :  { %v2702_v10 = vpop.eup %2701  ;;  %v728_v11 = vadd.f32 %v2698_v7, %v724_v8 }
 0x4b6   :  { %v723_v12 = vadd.f32 %v2702_v10, %v2700_v9  ;;  %v2704_v13 = vpop.eup %2703 }
 0x4b7   :  { %2709 = vrcp.f32 %v728_v11 }
 0x4b8   :  { %v727_v15 = vadd.f32 %v2704_v13, %v723_v12 }
 0x4ba   :  { %2711 = vrcp.f32 %v727_v15 }
 0x4be   :  { %v2706_v16 = vpop.eup %2705 }
 0x4bf   :  { %v734_v35 = vmul.f32 %v2706_v16, %v2682_v52  ;;  %v742_v36 = vmul.f32 %v2706_v16, %v2684_v53  ;;  %v754_v44 = vmul.f32 %v2706_v16, %v2686_v54 }
 0x4c1   :  { %v2708_v37 = vpop.eup %2707  ;;  %v738_v38 = vmul.f32 %v2995_v23, %v734_v35  ;;  %v746_v40 = vmul.f32 %v3053_v31, %v742_v36  ;;  %v758_v23 = vmul.f32 %v3096_v56, %v754_v44 }
 0x4c2   :  { %v733_v41 = vmul.f32 %v2708_v37, %v2688_v63  ;;  %v741_v42 = vmul.f32 %v2708_v37, %v2690_v55  ;;  %v753_v43 = vmul.f32 %v2708_v37, %v2692_v1 }
 0x4c3   :  { %v750_v48 = vadd.f32 %v746_v40, %v738_v38 }
 0x4c4   :  { %v2710_v45 = vpop.eup %2709  ;;  %v737_v46 = vmul.f32 %v733_v41, %v2997_v24  ;;  %v745_v47 = vmul.f32 %v741_v42, %v3055_v32  ;;  %v757_v59 = vmul.f32 %v753_v43, %v3098_v57 }
 0x4c5   :  { %v736_v49 = vmul.f32 %v2710_v45, %v2694_v3  ;;  %v744_v50 = vmul.f32 %v2710_v45, %v2696_v4  ;;  %v762_v24 = vadd.f32 %v758_v23, %v750_v48  ;;  %v756_v55 = vmul.f32 %v2710_v45, %v2698_v7 }
 0x4c6   :  { %v749_v51 = vadd.f32 %v745_v47, %v737_v46 }
 0x4c7   :  { %v2712_v61 = vpop.eup %2711  ;;  %v740_v31 = vmul.f32 %v2999_v25, %v736_v49  ;;  %v748_v52 = vmul.f32 %v3059_v33, %v744_v50  ;;  %v760_v33 = vmul.f32 %v3102_v58, %v756_v55 }
 0x4c8   :  { %v761_v53 = vadd.f32 %v757_v59, %v749_v51  ;;  %v735_v54 = vmul.f32 %v2712_v61, %v2700_v9  ;;  %v743_v62 = vmul.f32 %v2712_v61, %v2702_v10  ;;  %v755_v63 = vmul.f32 %v2712_v61, %v2704_v13 }
 0x4c9   :  { %v752_v57 = vadd.f32 %v748_v52, %v740_v31 }
 0x4ca   :  { %2489 = vmatprep.mubr.msk.f32.mxu1 %vm177_vm1, %v761_v53  ;;  %v739_v32 = vmul.f32 %v735_v54, %v3002_v26  ;;  %v747_v0 = vmul.f32 %v743_v62, %v3064_v34  ;;  %v759_v25 = vmul.f32 %v755_v63, %v3106_v60  ;;  %v2218_v34 = vld [vmem:[%s3501_s7] ss:$0 sm:$0xff] }
 0x4cb   :  { %2490 = vmatmul.mubr.msk.f32.vlgmr.msra.gmra.mxu1 %vm177_vm1, %v762_v24  ;;  %v764_v2 = vadd.f32 %v760_v33, %v752_v57 }
 0x4cc   :  { %v751_v56 = vadd.f32 %v747_v0, %v739_v32 }
 0x4ce   :  { %v763_v1 = vadd.f32 %v759_v25, %v751_v56 }
 0x4d0   :  { %2492 = vmatprep.mubr.msk.f32.mxu1 %vm177_vm1, %v763_v1 }
 0x4d1   :  { %2493 = vmatmul.mubr.msk.f32.gmra.mxu1 %vm177_vm1, %v764_v2 }
 0x4d2   :  { %2503 = vmatprep.mubr.msk.f32.mxu1 %vm177_vm1, %v2947_v6 }
 0x58b   :  { %v2491_v26 = vpop.f32.mrf.mxu1 }
 0x58c   :  { %v860_v5 = vadd.f32 %v2491_v26, %v2218_v34 }
 0x58d   :  { %v854_v3 = vpop.f32.mrf.mxu1 }
 0x58e   :  { %v855_v58 = vadd.f32 %v2218_v34, %v854_v3  ;;  %v874_v10 = vmax.f32 %v860_v5, 0.0 }
 0x590   :  { %v873_v13 = vmax.f32 %v855_v58, 0.0  ;;  %v878_v16 = vadd.f32 %v874_v10, %v2962_v18 }
 0x591   :  { %v2494_v4 = vpop.f32.mrf.mxu1 }
 0x592   :  { %v870_v60 = vadd.f32 %v2494_v4, %v2218_v34  ;;  %v877_v35 = vadd.f32 %v873_v13, %v2966_v19 }
 0x593   :  { %v864_v7 = vpop.f32.mrf.mxu1 }
 0x594   :  { %v876_v8 = vmax.f32 %v870_v60, 0.0  ;;  %v865_v9 = vadd.f32 %v2218_v34, %v864_v7 }
 0x596   :  { %v880_v11 = vadd.f32 %v876_v8, %v2956_v14  ;;  %v875_v12 = vmax.f32 %v865_v9, 0.0 }
 0x598   :  { %v879_v15 = vadd.f32 %v875_v12, %v2958_v17  ;;  %2495 = vmatprep.subr.mxu1 %v880_v11 }
 0x599   :  { %2496 = vmatpush3.msra.mxu1 %v880_v11 }
 0x59a   :  { %2497 = vmatprep.subr.mxu1 %v879_v15 }
 0x59b   :  { %2498 = vmatpush3.msra.mxu1 %v879_v15  ;;  %v2250_v15 = vld [vmem:[%s3500_s6 + $0x38] sm:$0xff] }
 0x59c   :  { %2499 = vmatprep.subr.mxu1 %v878_v16 }
 0x59d   :  { %2500 = vmatpush3.msra.mxu1 %v878_v16  ;;  %v2249_v16 = vld [vmem:[%s3500_s6 + $0x30] sm:$0xff] }
 0x59e   :  { %2501 = vmatprep.subr.mxu1 %v877_v35 }
 0x59f   :  { %2502 = vmatpush3.msra.mxu1 %v877_v35  ;;  %v2248_v35 = vld [vmem:[%s3500_s6 + $0x28] sm:$0xff] }
 0x5a0   :  { %2504 = vmatmul.mubr.msk.f32.vlgmr.msra.gmra.mxu1 %vm177_vm1, %v2973_v20 }
 0x5a1   :  { %2506 = vmatprep.mubr.msk.f32.mxu1 %vm177_vm1, %v2979_v21 }
 0x5a4   :  { %2507 = vmatmul.mubr.msk.f32.gmra.mxu1 %vm177_vm1, %v2989_v22 }
 0x5a5   :  { %2517 = vmatprep.mubr.msk.f32.mxu1 %vm177_vm1, %v2947_v6 }
 0x660   :  { %v3175_v14 = vpop.f32.mrf.mxu1 }
 0x662   :  { %v3177_v17 = vpop.f32.mrf.mxu1 }
 0x664   :  { %v3179_v18 = vpop.f32.mrf.mxu1 }
 0x665   :  { %2509 = vmatprep.subr.mxu1 %v3179_v18 }
 0x666   :  { %v3182_v19 = vpop.f32.mrf.mxu1  ;;  %2510 = vmatpush3.msra.mxu1 %v3179_v18 }
 0x667   :  { %2511 = vmatprep.subr.mxu1 %v3182_v19 }
 0x668   :  { %2512 = vmatpush3.msra.mxu1 %v3182_v19 }
 0x669   :  { %2513 = vmatprep.subr.mxu1 %v3175_v14 }
 0x66a   :  { %2514 = vmatpush3.msra.mxu1 %v3175_v14 }
 0x66b   :  { %2515 = vmatprep.subr.mxu1 %v3177_v17 }
 0x66c   :  { %2516 = vmatpush3.msra.mxu1 %v3177_v17 }
 0x66d   :  { %2518 = vmatmul.mubr.msk.f32.vlgmr.msra.gmra.mxu1 %vm177_vm1, %v2973_v20  ;;  %2537 = vmatprep.subr.mxu1 %v3012_v27 }
 0x66e   :  { %2538 = vmatpush3.msra.mxu1 %v3012_v27  ;;  %2520 = vmatprep.mubr.msk.f32.mxu1 %vm177_vm1, %v2979_v21 }
 0x66f   :  { %2539 = vmatprep.subr.mxu1 %v3019_v28 }
 0x670   :  { %2540 = vmatpush3.msra.mxu1 %v3019_v28 }
 0x671   :  { %2521 = vmatmul.mubr.msk.f32.gmra.mxu1 %vm177_vm1, %v2989_v22  ;;  %2541 = vmatprep.subr.mxu1 %v3030_v29 }
 0x672   :  { %2542 = vmatpush3.msra.mxu1 %v3030_v29  ;;  %2545 = vmatprep.mubr.msk.f32.mxu1 %vm177_vm1, %v3177_v17 }
 0x673   :  { %2543 = vmatprep.subr.mxu1 %v3037_v30 }
 0x674   :  { %2544 = vmatpush3.msra.mxu1 %v3037_v30 }
 0x675   :  { %2546 = vmatmul.mubr.msk.f32.vlgmr.msra.gmra.mxu1 %vm177_vm1, %v3175_v14 }
 0x676   :  { %2548 = vmatprep.mubr.msk.f32.mxu1 %vm177_vm1, %v3182_v19 }
 0x679   :  { %2549 = vmatmul.mubr.msk.f32.gmra.mxu1 %vm177_vm1, %v3179_v18 }
 0x72d   :  { %v3213_v6 = vpop.f32.mrf.mxu1 }
 0x72f   :  { %v3215_v27 = vpop.f32.mrf.mxu1 }
 0x730   :  { %2551 = vmatprep.mubr.msk.f32.mxu1 %vm177_vm1, %v3215_v27 }
 0x731   :  { %v3219_v28 = vpop.f32.mrf.mxu1  ;;  %2552 = vmatmul.mubr.msk.f32.gmra.mxu1 %vm177_vm1, %v3213_v6 }
 0x732   :  { %2523 = vmatprep.subr.mxu0 %v3219_v28 }
 0x733   :  { %v3224_v29 = vpop.f32.mrf.mxu1  ;;  %2524 = vmatpush3.msra.mxu0 %v3219_v28 }
 0x734   :  { %2525 = vmatprep.subr.mxu0 %v3224_v29  ;;  %2554 = vmatprep.mubr.msk.f32.mxu1 %vm177_vm1, %v3224_v29 }
 0x735   :  { %2526 = vmatpush3.msra.mxu0 %v3224_v29  ;;  %v2547_v30 = vpop.f32.mrf.mxu1  ;;  %2555 = vmatmul.mubr.msk.f32.gmra.mxu1 %vm177_vm1, %v3219_v28 }
 0x736   :  { %2713 = vtanh.f32 %v2547_v30  ;;  %2527 = vmatprep.subr.mxu0 %v3213_v6 }
 0x737   :  { %2528 = vmatpush3.msra.mxu0 %v3213_v6  ;;  %v1238_v36 = vpop.f32.mrf.mxu1 }
 0x738   :  { %2715 = vtanh.f32 %v1238_v36  ;;  %2529 = vmatprep.subr.mxu0 %v3215_v27 }
 0x739   :  { %2530 = vmatpush3.msra.mxu0 %v3215_v27  ;;  %v2550_v37 = vpop.f32.mrf.mxu1 }
 0x73a   :  { %2717 = vtanh.f32 %v2550_v37  ;;  %2532 = vmatmul.mubr.msk.f32.vlgmr.msra.gmra.mxu0 %vm177_vm1, %v2973_v20  ;;  %2563 = vmatprep.subr.mxu0 %v2250_v15 }
 0x73b   :  { %v1248_v38 = vpop.f32.mrf.mxu1  ;;  %2534 = vmatprep.mubr.msk.f32.mxu0 %vm177_vm1, %v2979_v21  ;;  %2564 = vmatpush3.msra.mxu0 %v2250_v15 }
 0x73c   :  { %2719 = vtanh.f32 %v1248_v38  ;;  %2565 = vmatprep.subr.mxu0 %v2249_v16 }
 0x73d   :  { %2566 = vmatpush3.msra.mxu0 %v2249_v16 }
 0x73e   :  { %2535 = vmatmul.mubr.msk.f32.gmra.mxu0 %vm177_vm1, %v2989_v22  ;;  %2567 = vmatprep.subr.mxu0 %v2248_v35 }
 0x73f   :  { %2568 = vmatpush3.msra.mxu0 %v2248_v35 }
 0x743   :  { %v2714_v40 = vpop.eup %2713 }
 0x744   :  { %v1310_v41 = vmul.f32 %v2714_v40, %v3086_v39 }
 0x745   :  { %v2716_v42 = vpop.eup %2715 }
 0x746   :  { %v1324_v43 = vsel %vm177_vm1, %v1310_v41, 0.0  ;;  %v1309_v44 = vmul.f32 %v2716_v42, %v3086_v39 }
 0x747   :  { %v2718_v45 = vpop.eup %2717  ;;  %1325 = vadd.xlane.f32.xlu0 %v1324_v43 }
 0x748   :  { %v1321_v20 = vsel %vm177_vm1, %v1309_v44, 0.0  ;;  %v1312_v46 = vmul.f32 %v2718_v45, %v3086_v39 }
 0x749   :  { %v2720_v47 = vpop.eup %2719 }
 0x74a   :  { %v1330_v21 = vsel %vm177_vm1, %v1312_v46, 0.0  ;;  %v1311_v22 = vmul.f32 %v2720_v47, %v3086_v39 }
 0x74b   :  { %1322 = vadd.xlane.f32.xlu0 %v1321_v20 }
 0x74c   :  { %v1327_v48 = vsel %vm177_vm1, %v1311_v22, 0.0 }
 0x74f   :  { %1331 = vadd.xlane.f32.xlu0 %v1330_v21 }
 0x753   :  { %1328 = vadd.xlane.f32.xlu0 %v1327_v48 }
 0x7d0   :  { %v1326_v36 = vpop.xlane.xlu0 %1325 }
 0x7d4   :  { %v1323_v38 = vpop.xlane.xlu0 %1322 }
 0x7d8   :  { %v1332_v41 = vpop.xlane.xlu0 %1331 }
 0x7dc   :  { %v1329_v43 = vpop.xlane.xlu0 %1328 }
 0x7f1   :  { %v2553_v49 = vpop.f32.mrf.mxu1 }
 0x7f2   :  { %2721 = vtanh.f32 %v2553_v49 }
 0x7f3   :  { %v1258_v50 = vpop.f32.mrf.mxu1 }
 0x7f4   :  { %2723 = vtanh.f32 %v1258_v50 }
 0x7f5   :  { %v2556_v51 = vpop.f32.mrf.mxu1 }
 0x7f6   :  { %2725 = vtanh.f32 %v2556_v51 }
 0x7f7   :  { %v1268_v59 = vpop.f32.mrf.mxu1 }
 0x7f8   :  { %2727 = vtanh.f32 %v1268_v59 }
 0x7fa   :  { %v3251_v61 = vpop.f32.mrf.mxu0 }
 0x7fc   :  { %v3253_v23 = vpop.f32.mrf.mxu0 }
 0x7fd   :  { %2557 = vmatprep.mubr.msk.f32.mxu1 %vm177_vm1, %v3253_v23 }
 0x7fe   :  { %v3257_v31 = vpop.f32.mrf.mxu0  ;;  %2558 = vmatmul.mubr.msk.f32.gmra.mxu1 %vm177_vm1, %v3251_v61 }
 0x7ff   :  { %v2722_v52 = vpop.eup %2721 }
 0x800   :  { %v3261_v53 = vpop.f32.mrf.mxu0  ;;  %v1314_v54 = vmul.f32 %v2722_v52, %v3086_v39 }
 0x801   :  { %v2724_v62 = vpop.eup %2723  ;;  %2560 = vmatprep.mubr.msk.f32.mxu1 %vm177_vm1, %v3261_v53 }
 0x802   :  { %2561 = vmatmul.mubr.msk.f32.gmra.mxu1 %vm177_vm1, %v3257_v31  ;;  %v1336_v63 = vsel %vm177_vm1, %v1314_v54, 0.0  ;;  %v1313_v24 = vmul.f32 %v2724_v62, %v3086_v39 }
 0x803   :  { %v2726_v55 = vpop.eup %2725  ;;  %1337 = vadd.xlane.f32.xlu1 %v1336_v63 }
 0x804   :  { %v1333_v32 = vsel %vm177_vm1, %v1313_v24, 0.0  ;;  %v1316_v0 = vmul.f32 %v2726_v55, %v3086_v39 }
 0x805   :  { %v2728_v57 = vpop.eup %2727 }
 0x806   :  { %v1342_v56 = vsel %vm177_vm1, %v1316_v0, 0.0  ;;  %v1315_v25 = vmul.f32 %v2728_v57, %v3086_v39 }
 0x807   :  { %1334 = vadd.xlane.f32.xlu1 %v1333_v32 }
 0x808   :  { %v1339_v33 = vsel %vm177_vm1, %v1315_v25, 0.0 }
 0x80b   :  { %1343 = vadd.xlane.f32.xlu1 %v1342_v56 }
 0x80f   :  { %1340 = vadd.xlane.f32.xlu1 %v1339_v33 }
 0x88c   :  { %v1338_v30 = vpop.xlane.xlu1 %1337 }
 0x88d   :  { %v1358_v44 = vmax.f32 %v1326_v36, %v1338_v30 }
 0x890   :  { %v1335_v37 = vpop.xlane.xlu1 %1334 }
 0x891   :  { %v1357_v20 = vmax.f32 %v1323_v38, %v1335_v37 }
 0x894   :  { %v1344_v40 = vpop.xlane.xlu1 %1343 }
 0x895   :  { %v1360_v50 = vmax.f32 %v1332_v41, %v1344_v40 }
 0x898   :  { %v1341_v42 = vpop.xlane.xlu1 %1340 }
 0x899   :  { %v1359_v51 = vmax.f32 %v1329_v43, %v1341_v42 }
 0x8be   :  { %v2559_v1 = vpop.f32.mrf.mxu1 }
 0x8bf   :  { %2729 = vtanh.f32 %v2559_v1 }
 0x8c0   :  { %v1278_v2 = vpop.f32.mrf.mxu1 }
 0x8c1   :  { %2731 = vtanh.f32 %v1278_v2 }
 0x8c2   :  { %v2562_v26 = vpop.f32.mrf.mxu1 }
 0x8c3   :  { %2733 = vtanh.f32 %v2562_v26 }
 0x8c4   :  { %v1288_v3 = vpop.f32.mrf.mxu1 }
 0x8c5   :  { %2735 = vtanh.f32 %v1288_v3 }
 0x8cc   :  { %v2730_v34 = vpop.eup %2729 }
 0x8cd   :  { %v1318_v4 = vmul.f32 %v2730_v34, %v3086_v39 }
 0x8ce   :  { %v2732_v5 = vpop.eup %2731 }
 0x8cf   :  { %v1348_v60 = vsel %vm177_vm1, %v1318_v4, 0.0  ;;  %v1317_v7 = vmul.f32 %v2732_v5, %v3086_v39 }
 0x8d0   :  { %v2734_v58 = vpop.eup %2733  ;;  %1349 = vadd.xlane.f32.xlu1 %v1348_v60 }
 0x8d1   :  { %v1345_v8 = vsel %vm177_vm1, %v1317_v7, 0.0  ;;  %v1320_v9 = vmul.f32 %v2734_v58, %v3086_v39 }
 0x8d2   :  { %v2736_v10 = vpop.eup %2735  ;;  %1346 = vadd.xlane.f32.xlu0 %v1345_v8 }
 0x8d3   :  { %v1354_v11 = vsel %vm177_vm1, %v1320_v9, 0.0  ;;  %v1319_v12 = vmul.f32 %v2736_v10, %v3086_v39  ;;  %v2247_v39 = vld [vmem:[%s3500_s6 + $0x20] sm:$0xff] }
 0x8d4   :  { %1355 = vadd.xlane.f32.xlu1 %v1354_v11  ;;  %2569 = vmatprep.subr.mxu0 %v2247_v39 }
 0x8d5   :  { %v1351_v13 = vsel %vm177_vm1, %v1319_v12, 0.0  ;;  %2570 = vmatpush3.msra.mxu0 %v2247_v39 }
 0x8d6   :  { %1352 = vadd.xlane.f32.xlu0 %v1351_v13 }
 0x959   :  { %v1350_v45 = vpop.xlane.xlu1 %1349 }
 0x95a   :  { %v1362_v46 = vmax.f32 %v1358_v44, %v1350_v45 }
 0x95b   :  { %v1347_v47 = vpop.xlane.xlu0 %1346 }
 0x95c   :  { %v1366_v21 = vsub.f32 %v1326_v36, %v1362_v46  ;;  %v1378_v22 = vsub.f32 %v1338_v30, %v1362_v46  ;;  %v1390_v48 = vsub.f32 %v1350_v45, %v1362_v46  ;;  %v1361_v49 = vmax.f32 %v1357_v20, %v1347_v47 }
 0x95d   :  { %v1356_v59 = vpop.xlane.xlu1 %1355 }
 0x95e   :  { %v1371_v52 = vmul.f32 1.442695, %v1366_v21  ;;  %v1383_v54 = vmul.f32 1.442695, %v1378_v22  ;;  %v1395_v62 = vmul.f32 1.442695, %v1390_v48  ;;  %v1365_v63 = vsub.f32 %v1323_v38, %v1361_v49 }
 0x95f   :  { %v1377_v24 = vsub.f32 %v1335_v37, %v1361_v49  ;;  %v1389_v55 = vsub.f32 %v1347_v47, %v1361_v49  ;;  %v1364_v32 = vmax.f32 %v1360_v50, %v1356_v59  ;;  %v1353_v0 = vpop.xlane.xlu0 %1352 }
 0x960   :  { %2737 = vpow2.f32 %v1371_v52  ;;  %v1369_v57 = vmul.f32 1.442695, %v1365_v63  ;;  %v1363_v56 = vmax.f32 %v1359_v51, %v1353_v0 }
 0x961   :  { %2739 = vpow2.f32 %v1383_v54  ;;  %v1381_v25 = vmul.f32 1.442695, %v1377_v24  ;;  %v1393_v33 = vmul.f32 1.442695, %v1389_v55  ;;  %v1368_v1 = vsub.f32 %v1332_v41, %v1364_v32 }
 0x962   :  { %2741 = vpow2.f32 %v1395_v62  ;;  %v1380_v2 = vsub.f32 %v1344_v40, %v1364_v32  ;;  %v1392_v26 = vsub.f32 %v1356_v59, %v1364_v32  ;;  %v1367_v3 = vsub.f32 %v1329_v43, %v1363_v56 }
 0x963   :  { %2743 = vpow2.f32 %v1369_v57  ;;  %v1375_v34 = vmul.f32 1.442695, %v1368_v1  ;;  %v1379_v4 = vsub.f32 %v1341_v42, %v1363_v56  ;;  %v1391_v7 = vsub.f32 %v1353_v0, %v1363_v56 }
 0x964   :  { %2745 = vpow2.f32 %v1381_v25  ;;  %v1387_v5 = vmul.f32 1.442695, %v1380_v2  ;;  %v1399_v60 = vmul.f32 1.442695, %v1392_v26  ;;  %v1373_v58 = vmul.f32 1.442695, %v1367_v3 }
 0x965   :  { %2747 = vpow2.f32 %v1393_v33  ;;  %v1385_v8 = vmul.f32 1.442695, %v1379_v4  ;;  %v1397_v9 = vmul.f32 1.442695, %v1391_v7  ;;  %v2829_v7 = vmov 0.0  }
 0x966   :  { %2749 = vpow2.f32 %v1375_v34  ;;  %2602 = vmatprep.subr.mxu1 %v2829_v7  ;;  %2634 = vmatprep.mubr.msk.f32.mxu1 %vm2833_vm8, %v2829_v7 }
 0x967   :  { %2751 = vpow2.f32 %v1387_v5 }
 0x968   :  { %2753 = vpow2.f32 %v1399_v60 }
 0x969   :  { %2755 = vpow2.f32 %v1373_v58  ;;  %v2252_v58 = vld [vmem:[%s3501_s7 + $0x1] ss:$0 sm:$0xff] }
 0x96a   :  { %2757 = vpow2.f32 %v1385_v8 }
 0x96b   :  { %2759 = vpow2.f32 %v1397_v9 }
 0x96d   :  { %v2738_v10 = vpop.eup %2737 }
 0x96e   :  { %v2740_v11 = vpop.eup %2739 }
 0x96f   :  { %v2742_v12 = vpop.eup %2741  ;;  %v1402_v13 = vadd.f32 %v2740_v11, %v2738_v10 }
 0x970   :  { %v2744_v15 = vpop.eup %2743 }
 0x971   :  { %v2746_v16 = vpop.eup %2745  ;;  %v1406_v35 = vadd.f32 %v2742_v12, %v1402_v13 }
 0x972   :  { %v2748_v39 = vpop.eup %2747  ;;  %v1401_v30 = vadd.f32 %v2746_v16, %v2744_v15 }
 0x973   :  { %v2750_v36 = vpop.eup %2749  ;;  %2761 = vrcp.f32 %v1406_v35 }
 0x974   :  { %v2752_v37 = vpop.eup %2751  ;;  %v1405_v38 = vadd.f32 %v2748_v39, %v1401_v30 }
 0x975   :  { %v2754_v40 = vpop.eup %2753  ;;  %v1404_v41 = vadd.f32 %v2752_v37, %v2750_v36 }
 0x976   :  { %v2756_v42 = vpop.eup %2755  ;;  %2763 = vrcp.f32 %v1405_v38 }
 0x977   :  { %v2758_v43 = vpop.eup %2757  ;;  %v1408_v44 = vadd.f32 %v2754_v40, %v1404_v41 }
 0x978   :  { %v1403_v45 = vadd.f32 %v2758_v43, %v2756_v42  ;;  %v2760_v20 = vpop.eup %2759 }
 0x979   :  { %2765 = vrcp.f32 %v1408_v44 }
 0x97a   :  { %v1407_v46 = vadd.f32 %v2760_v20, %v1403_v45 }
 0x97c   :  { %2767 = vrcp.f32 %v1407_v46 }
 0x980   :  { %v2762_v47 = vpop.eup %2761 }
 0x981   :  { %v1414_v21 = vmul.f32 %v2762_v47, %v2738_v10  ;;  %v1422_v22 = vmul.f32 %v2762_v47, %v2740_v11  ;;  %v1434_v54 = vmul.f32 %v2762_v47, %v2742_v12 }
 0x983   :  { %v2764_v48 = vpop.eup %2763  ;;  %v1418_v49 = vmul.f32 %v3175_v14, %v1414_v21  ;;  %v1426_v50 = vmul.f32 %v3213_v6, %v1422_v22  ;;  %v1438_v14 = vmul.f32 %v3251_v61, %v1434_v54 }
 0x984   :  { %v1413_v51 = vmul.f32 %v2764_v48, %v2744_v15  ;;  %v1421_v59 = vmul.f32 %v2764_v48, %v2746_v16  ;;  %v1433_v52 = vmul.f32 %v2764_v48, %v2748_v39 }
 0x985   :  { %v1430_v55 = vadd.f32 %v1426_v50, %v1418_v49 }
 0x986   :  { %v2766_v62 = vpop.eup %2765  ;;  %v1417_v63 = vmul.f32 %v1413_v51, %v3177_v17  ;;  %v1425_v24 = vmul.f32 %v1421_v59, %v3215_v27  ;;  %v1437_v56 = vmul.f32 %v1433_v52, %v3253_v23 }
 0x987   :  { %v1416_v32 = vmul.f32 %v2766_v62, %v2750_v36  ;;  %v1424_v0 = vmul.f32 %v2766_v62, %v2752_v37  ;;  %v1442_v17 = vadd.f32 %v1438_v14, %v1430_v55  ;;  %v1436_v34 = vmul.f32 %v2766_v62, %v2754_v40 }
 0x988   :  { %v1429_v57 = vadd.f32 %v1425_v24, %v1417_v63 }
 0x989   :  { %v2768_v25 = vpop.eup %2767  ;;  %v1420_v6 = vmul.f32 %v3179_v18, %v1416_v32  ;;  %v1428_v33 = vmul.f32 %v3219_v28, %v1424_v0  ;;  %v1440_v28 = vmul.f32 %v3257_v31, %v1436_v34  ;;  %v1560_v31 = vld [vmem:[%s3504_s10 + $0x8] sm:$0xff] }
 0x98a   :  { %v1441_v1 = vadd.f32 %v1437_v56, %v1429_v57  ;;  %v1415_v2 = vmul.f32 %v2768_v25, %v2756_v42  ;;  %v1423_v26 = vmul.f32 %v2768_v25, %v2758_v43  ;;  %v1435_v3 = vmul.f32 %v2768_v25, %v2760_v20  ;;  %v2261_v42 = vld [vmem:[%s3505_s11] ss:$0 sm:$0xff] }
 0x98b   :  { %v1432_v23 = vadd.f32 %v1428_v33, %v1420_v6 }
 0x98c   :  { %2571 = vmatprep.mubr.msk.f32.mxu0 %vm177_vm1, %v1441_v1  ;;  %v1419_v27 = vmul.f32 %v1415_v2, %v3182_v19  ;;  %v1427_v4 = vmul.f32 %v1423_v26, %v3224_v29  ;;  %v1439_v18 = vmul.f32 %v1435_v3, %v3261_v53  ;;  %v1562_v19 = vld [vmem:[%s3504_s10 + $0x18] sm:$0xff]  ;;  %v1561_v29 = vld [vmem:[%s3504_s10 + $0x10] sm:$0xff]  ;;  %v1559_v53 = vld [vmem:[%s3504_s10] sm:$0xff] }
 0x98d   :  { %2572 = vmatmul.mubr.msk.f32.vlgmr.msra.gmra.mxu0 %vm177_vm1, %v1442_v17  ;;  %v1444_v60 = vadd.f32 %v1440_v28, %v1432_v23  ;;  %2577 = vmatprep.subr.mxu0 %v1562_v19 }
 0x98e   :  { %v1431_v61 = vadd.f32 %v1427_v4, %v1419_v27  ;;  %2578 = vmatpush3.msra.mxu0 %v1562_v19 }
 0x98f   :  { %2579 = vmatprep.subr.mxu0 %v1561_v29 }
 0x990   :  { %v1443_v5 = vadd.f32 %v1439_v18, %v1431_v61  ;;  %2580 = vmatpush3.msra.mxu0 %v1561_v29 }
 0x991   :  { %2581 = vmatprep.subr.mxu0 %v1560_v31 }
 0x992   :  { %2574 = vmatprep.mubr.msk.f32.mxu0 %vm177_vm1, %v1443_v5  ;;  %2582 = vmatpush3.msra.mxu0 %v1560_v31 }
 0x993   :  { %2575 = vmatmul.mubr.msk.f32.gmra.mxu0 %vm177_vm1, %v1444_v60  ;;  %2583 = vmatprep.subr.mxu0 %v1559_v53 }
 0x994   :  { %2584 = vmatpush3.msra.mxu0 %v1559_v53 }
 0x995   :  { %2591 = vmatprep.subr.mxu0 %v2829_v7 }
 0xa4d   :  { %v2573_v8 = vpop.f32.mrf.mxu0 }
 0xa4e   :  { %v1542_v9 = vadd.f32 %v2573_v8, %v2252_v58 }
 0xa4f   :  { %v1536_v10 = vpop.f32.mrf.mxu0 }
 0xa50   :  { %v1537_v11 = vadd.f32 %v2252_v58, %v1536_v10  ;;  %v1556_v13 = vmax.f32 %v1542_v9, 0.0 }
 0xa52   :  { %v1555_v12 = vmax.f32 %v1537_v11, 0.0 }
 0xa53   :  { %v2576_v15 = vpop.f32.mrf.mxu0 }
 0xa54   :  { %v1552_v16 = vadd.f32 %v2576_v15, %v2252_v58  ;;  %2585 = vmatprep.mubr.msk.f32.mxu0 %vm177_vm1, %v1555_v12 }
 0xa55   :  { %v1546_v35 = vpop.f32.mrf.mxu0  ;;  %2586 = vmatmul.mubr.msk.f32.vlgmr.msra.gmra.mxu0 %vm177_vm1, %v1556_v13 }
 0xa56   :  { %v1558_v39 = vmax.f32 %v1552_v16, 0.0  ;;  %v1547_v30 = vadd.f32 %v2252_v58, %v1546_v35 }
 0xa58   :  { %v1557_v36 = vmax.f32 %v1547_v30, 0.0  ;;  %2592 = vmatpush3.msra.mxu0 %v1558_v39 }
 0xa59   :  { %2593 = vmatprep.subr.mxu0 %v2829_v7 }
 0xa5a   :  { %2588 = vmatprep.mubr.msk.f32.mxu0 %vm177_vm1, %v1557_v36  ;;  %2594 = vmatpush3.msra.mxu0 %v1557_v36 }
 0xa5b   :  { %2589 = vmatmul.mubr.msk.f32.gmra.mxu0 %vm177_vm1, %v1558_v39  ;;  %2595 = vmatprep.subr.mxu0 %v2829_v7 }
 0xa5c   :  { %2596 = vmatpush3.msra.mxu0 %v1556_v13  ;;  %2599 = vmatprep.mubr.msk.f32.mxu0 %vm2833_vm8, %v2829_v7 }
 0xa5d   :  { %2597 = vmatprep.subr.mxu0 %v2829_v7 }
 0xa5e   :  { %2598 = vmatpush3.msra.mxu0 %v1555_v12 }
 0xa5f   :  { %2637 = vmatprep.subr.mxu0 %v2829_v7 }
 0xb15   :  { %v2587_v37 = vpop.f32.mrf.mxu0 }
 0xb16   :  { %2769 = vtanh.f32 %v2587_v37 }
 0xb17   :  { %v1641_v38 = vpop.f32.mrf.mxu0 }
 0xb18   :  { %2771 = vtanh.f32 %v1641_v38 }
 0xb1b   :  { %v2590_v40 = vpop.f32.mrf.mxu0 }
 0xb1c   :  { %2773 = vtanh.f32 %v2590_v40 }
 0xb1d   :  { %v1651_v41 = vpop.f32.mrf.mxu0 }
 0xb1e   :  { %2775 = vtanh.f32 %v1651_v41 }
 0xb23   :  { %v2770_v43 = vpop.eup %2769 }
 0xb24   :  { %v1672_v44 = vmul.f32 %v2770_v43, %v2261_v42 }
 0xb25   :  { %v2772_v45 = vpop.eup %2771 }
 0xb26   :  { %1717 = vrot.lane.b32.xlu0 %v1672_v44, %s2830_s0  ;;  %1693 = vrot.lane.b32.xlu1 %v1672_v44, %s2831_s30  ;;  %v1671_v20 = vmul.f32 %v2772_v45, %v2261_v42  ;;  %v1678_v49 = vsel %vm177_vm1, %v1672_v44, 0.0 }
 0xb28   :  { %v1675_v48 = vsel %vm177_vm1, %v1671_v20, 0.0 }
 0xb29   :  { %v2774_v46 = vpop.eup %2773 }
 0xb2a   :  { %1741 = vrot.lane.b32.xlu0 %v1672_v44, %s2832_s18  ;;  %1715 = vrot.lane.b32.xlu1 %v1671_v20, %s2830_s0  ;;  %v1674_v21 = vmul.f32 %v2774_v46, %v2261_v42  ;;  %v65_v44 = vld [vmem:[%s3496_s2] sm:$0x3] }
 0xb2b   :  { %v2776_v47 = vpop.eup %2775  ;;  %v1811_v45 = vrot.slane %v65_v44, 6  ;;  %v1813_v46 = vrot.slane %v65_v44, 4 }
 0xb2c   :  { %v1673_v22 = vmul.f32 %v2776_v47, %v2261_v42  ;;  %v1684_v50 = vsel %vm177_vm1, %v1674_v21, 0.0 }
 0xb2d   :  { %v1818_v47 = vsel %vm1817_vm5, %v65_v44, %v1811_v45  ;;  %v2044_v45 = vld [vmem:[%s3508_s14 + $0x8] sm:$0xff] }
 0xb2e   :  { %1739 = vrot.lane.b32.xlu1 %v1671_v20, %s2832_s18  ;;  %1691 = vrot.lane.b32.xlu0 %v1671_v20, %s2831_s30  ;;  %v1681_v51 = vsel %vm177_vm1, %v1673_v22, 0.0  ;;  %v1823_v20 = vlaneseq }
 0xb32   :  { %1697 = vrot.lane.b32.xlu0 %v1674_v21, %s2831_s30  ;;  %1695 = vrot.lane.b32.xlu1 %v1673_v22, %s2831_s30 }
 0xb36   :  { %1721 = vrot.lane.b32.xlu0 %v1674_v21, %s2830_s0  ;;  %1719 = vrot.lane.b32.xlu1 %v1673_v22, %s2830_s0 }
 0xb3a   :  { %1743 = vrot.lane.b32.xlu1 %v1673_v22, %s2832_s18  ;;  %v1815_v22 = vrot.slane %v65_v44, 2  ;;  %v2045_v44 = vld [vmem:[%s3508_s14 + $0x10] sm:$0xff] }
 0xb3e   :  { %1745 = vrot.lane.b32.xlu1 %v1674_v21, %s2832_s18  ;;  %v1824_v21 = vshrl.u32 %v1823_v20, 7  ;;  %v2043_v20 = vld [vmem:[%s3508_s14] sm:$0xff] }
 0xb55   :  { %1676 = vadd.xlane.f32.xlu0 %v1675_v48  ;;  %v1820_v48 = vsel %vm1819_vm6, %v1818_v47, %v1813_v46  ;;  %v2263_v46 = vld [vmem:[%s3507_s13] ss:$0 sm:$0xff] }
 0xb59   :  { %1679 = vadd.xlane.f32.xlu0 %v1678_v49  ;;  %v1825_v49 = vsub.s32 0, %v1824_v21 }
 0xb62   :  { %1685 = vadd.xlane.f32.xlu1 %v1684_v50  ;;  %v1829_v50 = vsub.s32 1, %v1824_v21 }
 0xb66   :  { %1682 = vadd.xlane.f32.xlu1 %v1681_v51  ;;  %v1833_v51 = vsub.s32 2, %v1824_v21 }
 0xb98   :  { %v1718_v59 = vpop.permute.xlu0 %1717  ;;  %v1694_v52 = vpop.permute.xlu1 %1693 }
 0xb99   :  { %v1706_v54 = vsel %vm177_vm1, %v1694_v52, 0.0  ;;  %v1730_v24 = vsel %vm177_vm1, %v1718_v59, 0.0  ;;  %v1822_v59 = vsel %vm1821_vm7, %v1820_v48, %v1815_v22  ;;  %v1837_v52 = vsub.s32 3, %v1824_v21 }
 0xb9a   :  { %1707 = vadd.xlane.f32.xlu0 %v1706_v54 }
 0xb9c   :  { %v1742_v62 = vpop.permute.xlu0 %1741  ;;  %v1716_v63 = vpop.permute.xlu1 %1715 }
 0xb9d   :  { %v1754_v55 = vsel %vm177_vm1, %v1742_v62, 0.0  ;;  %v1727_v57 = vsel %vm177_vm1, %v1716_v63, 0.0  ;;  %v1843_v62 = vsub.f32 1.0, %v1822_v59 }
 0xb9e   :  { %1731 = vadd.xlane.f32.xlu0 %v1730_v24  ;;  %1755 = vadd.xlane.f32.xlu1 %v1754_v55 }
 0xba0   :  { %v1740_v32 = vpop.permute.xlu1 %1739  ;;  %v1692_v0 = vpop.permute.xlu0 %1691 }
 0xba1   :  { %v1703_v56 = vsel %vm177_vm1, %v1692_v0, 0.0  ;;  %v1751_v33 = vsel %vm177_vm1, %v1740_v32, 0.0 }
 0xba2   :  { %1728 = vadd.xlane.f32.xlu0 %v1727_v57  ;;  %1704 = vadd.xlane.f32.xlu1 %v1703_v56  ;;  %v1844_v56 = vmul.f32 -1e+30, %v1843_v62 }
 0xba4   :  { %v1698_v25 = vpop.permute.xlu0 %1697  ;;  %v1696_v14 = vpop.permute.xlu1 %1695 }
 0xba5   :  { %v1712_v6 = vsel %vm177_vm1, %v1698_v25, 0.0  ;;  %v1709_v2 = vsel %vm177_vm1, %v1696_v14, 0.0 }
 0xba6   :  { %1713 = vadd.xlane.f32.xlu0 %v1712_v6  ;;  %1752 = vadd.xlane.f32.xlu1 %v1751_v33 }
 0xba8   :  { %v1720_v1 = vpop.permute.xlu1 %1719  ;;  %v1722_v34 = vpop.permute.xlu0 %1721 }
 0xba9   :  { %v1733_v3 = vsel %vm177_vm1, %v1720_v1, 0.0  ;;  %v1736_v4 = vsel %vm177_vm1, %v1722_v34, 0.0 }
 0xbaa   :  { %1710 = vadd.xlane.f32.xlu0 %v1709_v2 }
 0xbac   :  { %v1744_v26 = vpop.permute.xlu1 %1743 }
 0xbad   :  { %v1757_v17 = vsel %vm177_vm1, %v1744_v26, 0.0 }
 0xbae   :  { %1734 = vadd.xlane.f32.xlu0 %v1733_v3  ;;  %1758 = vadd.xlane.f32.xlu1 %v1757_v17 }
 0xbb0   :  { %v1746_v27 = vpop.permute.xlu1 %1745 }
 0xbb1   :  { %v1760_v23 = vsel %vm177_vm1, %v1746_v27, 0.0 }
 0xbb2   :  { %1737 = vadd.xlane.f32.xlu0 %v1736_v4  ;;  %1761 = vadd.xlane.f32.xlu1 %v1760_v23 }
 0xbde   :  { %v1677_v61 = vpop.xlane.xlu0 %1676 }
 0xbe2   :  { %v1680_v28 = vpop.xlane.xlu0 %1679 }
 0xbeb   :  { %v1686_v18 = vpop.xlane.xlu1 %1685 }
 0xbef   :  { %v1683_v5 = vpop.xlane.xlu1 %1682 }
 0xc23   :  { %v1708_v60 = vpop.xlane.xlu0 %1707 }
 0xc24   :  { %v1765_v11 = vsel %vm1763_vm2, %v1680_v28, %v1708_v60  ;;  %v1962_v28 = vld [vmem:[%s3506_s12 + $0x68] sm:$0xff]  ;;  %v1960_v60 = vld [vmem:[%s3506_s12 + $0x58] sm:$0xff] }
 0xc27   :  { %v1732_v19 = vpop.xlane.xlu0 %1731  ;;  %v1756_v29 = vpop.xlane.xlu1 %1755 }
 0xc28   :  { %v1770_v13 = vsel %vm1768_vm3, %v1765_v11, %v1732_v19  ;;  %v1959_v19 = vld [vmem:[%s3506_s12 + $0x50] sm:$0xff] }
 0xc29   :  { %v1775_v16 = vsel %vm1773_vm4, %v1770_v13, %v1756_v29  ;;  %v1958_v29 = vld [vmem:[%s3506_s12 + $0x48] sm:$0xff]  ;;  %v1951_v11 = vld [vmem:[%s3506_s12 + $0x10] sm:$0xff]  ;;  %v1949_v13 = vld [vmem:[%s3506_s12] sm:$0xff] }
 0xc2b   :  { %v1729_v31 = vpop.xlane.xlu0 %1728  ;;  %v1705_v53 = vpop.xlane.xlu1 %1704 }
 0xc2c   :  { %v1764_v58 = vsel %vm1763_vm2, %v1677_v61, %v1705_v53  ;;  %v1964_v61 = vld [vmem:[%s3506_s12 + $0x78] sm:$0xff] }
 0xc2d   :  { %v1769_v10 = vsel %vm1768_vm3, %v1764_v58, %v1729_v31  ;;  %2603 = vmatpush3.msra.mxu1 %v1964_v61  ;;  %v1957_v31 = vld [vmem:[%s3506_s12 + $0x40] sm:$0xff]  ;;  %v1956_v53 = vld [vmem:[%s3506_s12 + $0x38] sm:$0xff]  ;;  %v1955_v58 = vld [vmem:[%s3506_s12 + $0x30] sm:$0xff] }
 0xc2e   :  { %2604 = vmatprep.subr.mxu1 %v2829_v7 }
 0xc2f   :  { %v1714_v8 = vpop.xlane.xlu0 %1713  ;;  %v1753_v9 = vpop.xlane.xlu1 %1752 }
 0xc30   :  { %v1774_v12 = vsel %vm1773_vm4, %v1769_v10, %v1753_v9  ;;  %v1767_v38 = vsel %vm1763_vm2, %v1686_v18, %v1714_v8  ;;  %v1963_v18 = vld [vmem:[%s3506_s12 + $0x70] sm:$0xff]  ;;  %v1954_v8 = vld [vmem:[%s3506_s12 + $0x28] sm:$0xff]  ;;  %v1953_v9 = vld [vmem:[%s3506_s12 + $0x20] sm:$0xff] }
 0xc31   :  { %1778 = vxpose.xlu0.b32.start [1/4] (short) (narrow) %v1774_v12, 8  ;;  %2605 = vmatpush3.msra.mxu1 %v1963_v18  ;;  %v1952_v10 = vld [vmem:[%s3506_s12 + $0x18] sm:$0xff]  ;;  %v1950_v12 = vld [vmem:[%s3506_s12 + $0x8] sm:$0xff] }
 0xc32   :  { %2606 = vmatprep.subr.mxu1 %v2829_v7 }
 0xc33   :  { %v1711_v15 = vpop.xlane.xlu0 %1710  ;;  %2607 = vmatpush3.msra.mxu1 %v1962_v28 }
 0xc34   :  { %v1766_v35 = vsel %vm1763_vm2, %v1683_v5, %v1711_v15  ;;  %v1961_v5 = vld [vmem:[%s3506_s12 + $0x60] sm:$0xff]  ;;  %2608 = vmatprep.subr.mxu1 %v2829_v7  ;;  %v2046_v15 = vld [vmem:[%s3508_s14 + $0x18] sm:$0xff] }
 0xc35   :  { %1779 = vxpose.xlu0.b32.cont [2/4] (short) (narrow) %v1775_v16, 8  ;;  %2609 = vmatpush3.msra.mxu1 %v1961_v5 }
 0xc36   :  { %2610 = vmatprep.subr.mxu1 %v2829_v7 }
 0xc37   :  { %v1735_v39 = vpop.xlane.xlu0 %1734  ;;  %v1759_v30 = vpop.xlane.xlu1 %1758  ;;  %2611 = vmatpush3.msra.mxu1 %v1960_v60 }
 0xc38   :  { %v1771_v36 = vsel %vm1768_vm3, %v1766_v35, %v1735_v39  ;;  %2612 = vmatprep.subr.mxu1 %v2829_v7 }
 0xc39   :  { %v1776_v37 = vsel %vm1773_vm4, %v1771_v36, %v1759_v30  ;;  %2613 = vmatpush3.msra.mxu1 %v1959_v19 }
 0xc3a   :  { %1780 = vxpose.xlu0.b32.cont [3/4] (short) (narrow) %v1776_v37, 8  ;;  %2614 = vmatprep.subr.mxu1 %v2829_v7 }
 0xc3b   :  { %v1738_v40 = vpop.xlane.xlu0 %1737  ;;  %v1762_v41 = vpop.xlane.xlu1 %1761  ;;  %2615 = vmatpush3.msra.mxu1 %v1958_v29 }
 0xc3c   :  { %v1772_v42 = vsel %vm1768_vm3, %v1767_v38, %v1738_v40  ;;  %2616 = vmatprep.subr.mxu1 %v2829_v7 }
 0xc3d   :  { %v1777_v43 = vsel %vm1773_vm4, %v1772_v42, %v1762_v41  ;;  %2617 = vmatpush3.msra.mxu1 %v1957_v31 }
 0xc3e   :  { %1781 = vxpose.xlu0.b32.end [4/4] (short) (narrow) %v1777_v43, 8  ;;  %2618 = vmatprep.subr.mxu1 %v2829_v7 }
 0xc3f   :  { %2619 = vmatpush3.msra.mxu1 %v1956_v53 }
 0xc40   :  { %2620 = vmatprep.subr.mxu1 %v2829_v7 }
 0xc41   :  { %2621 = vmatpush3.msra.mxu1 %v1955_v58 }
 0xc42   :  { %2622 = vmatprep.subr.mxu1 %v2829_v7 }
 0xc43   :  { %2623 = vmatpush3.msra.mxu1 %v1954_v8 }
 0xc44   :  { %2624 = vmatprep.subr.mxu1 %v2829_v7 }
 0xc45   :  { %2625 = vmatpush3.msra.mxu1 %v1953_v9 }
 0xc46   :  { %2626 = vmatprep.subr.mxu1 %v2829_v7 }
 0xc47   :  { %2627 = vmatpush3.msra.mxu1 %v1952_v10 }
 0xc48   :  { %2628 = vmatprep.subr.mxu1 %v2829_v7 }
 0xc49   :  { %2629 = vmatpush3.msra.mxu1 %v1951_v11 }
 0xc4a   :  { %2630 = vmatprep.subr.mxu1 %v2829_v7 }
 0xc4b   :  { %2631 = vmatpush3.msra.mxu1 %v1950_v12 }
 0xc4c   :  { %2632 = vmatprep.subr.mxu1 %v2829_v7 }
 0xc4d   :  { %2633 = vmatpush3.msra.mxu1 %v1949_v13 }
 0xcae   :  { %v1794_v54 = vpop.trf.xlu0 }
 0xcaf   :  { %v1826_v63 = vrot.slane %v1794_v54, %v1825_v49  ;;  %v1830_v24 = vrot.slane %v1794_v54, %v1829_v50  ;;  %v1834_v55 = vrot.slane %v1794_v54, %v1833_v51  ;;  %v1838_v32 = vrot.slane %v1794_v54, %v1837_v52  ;;  %v2264_v49 = vld [vmem:[%s3509_s15] ss:$0 sm:$0xff]  ;;  %s2834_s15 = smov [#allocation2]  }
 0xcb0   :  { %s2166_s11 = sshll.u32 %s2834_s15, 4  ;;  %s2167_s11 = int_to_ptr.vmem [resolvable:$true] %s2166_s11 }
 0xcb1   :  { %v1839_v0 = vsel %vm1817_vm5, %v1826_v63, %v1830_v24  ;;  %s2785_s19 = scalar_lea.vmem %s2167_s11, 32  ;;  %p2790_p1 = scmp.lt.s32.totalorder %s2167_s11, %s2167_s11 }
 0xcb2   :  { %v1840_v57 = vsel %vm1819_vm6, %v1839_v0, %v1834_v55  ;;  %p2786_p0 = scmp.ne.s32.totalorder %s2167_s11, %s2785_s19  ;;  %p2791_p2 = scmp.lt.s32.totalorder %s2785_s19, %s2785_s19 }
 0xcb3   :  { %v1841_v25 = vsel %vm1821_vm7, %v1840_v57, %v1838_v32  ;;  %v2141_v57 = vld [vmem:[%s3497_s3] sm:$0x3] }
 0xcb4   :  { %v1842_v14 = vmul.f32 %v1841_v25, %v1822_v59  ;;  %p2792_p3 = por %p2791_p2, %p2790_p1 }
 0xcb6   :  { %v1845_v6 = vadd.f32 %v1844_v56, %v1842_v14  ;;  %p2793_p4 = pnand %p2792_p3, %p2786_p0 }
 0xcb8   :  { %v1846_v33 = vsel %vm177_vm1, %v1845_v6, -inf }
 0xcb9   :  { %1847 = vmax.xlane.f32.xlu1 %v1846_v33 }
 0xd42   :  { %v1848_v1 = vpop.xlane.xlu1 %1847 }
 0xd43   :  { %v1849_v2 = vsub.f32 %v1845_v6, %v1848_v1 }
 0xd45   :  { %v1850_v26 = vmul.f32 1.442695, %v1849_v2 }
 0xd47   :  { %2777 = vpow2.f32 %v1850_v26 }
 0xd54   :  { %v2778_v3 = vpop.eup %2777 }
 0xd55   :  { %v1852_v17 = vmul.f32 %v2778_v3, %v1822_v59 }
 0xd57   :  { %v1853_v34 = vsel %vm177_vm1, %v1852_v17, 0.0 }
 0xd58   :  { %1854 = vadd.xlane.f32.xlu1 %v1853_v34 }
 0xde1   :  { %v1855_v27 = vpop.xlane.xlu1 %1854 }
 0xde2   :  { %2779 = vrcp.f32 %v1855_v27 }
 0xdef   :  { %v2780_v4 = vpop.eup %2779 }
 0xdf0   :  { %v1857_v23 = vmul.f32 %v2780_v4, %v1852_v17 }
 0xdf2   :  { %2600 = vmatmul.mubr.msk.f32.vlgmr.msra.gmra.mxu0 %vm177_vm1, %v1857_v23 }
 0xdf3   :  { %2645 = vmatprep.mubr.msk.f32.mxu0 %vm2833_vm8, %v2829_v7  ;;  %2638 = vmatpush3.msra.mxu0 %v2046_v15 }
 0xdf4   :  { %2639 = vmatprep.subr.mxu0 %v2829_v7 }
 0xdf5   :  { %2640 = vmatpush3.msra.mxu0 %v2045_v44 }
 0xdf6   :  { %2641 = vmatprep.subr.mxu0 %v2829_v7 }
 0xdf7   :  { %2642 = vmatpush3.msra.mxu0 %v2044_v45 }
 0xdf8   :  { %2643 = vmatprep.subr.mxu0 %v2829_v7 }
 0xdf9   :  { %2644 = vmatpush3.msra.mxu0 %v2043_v20 }
 0xeb2   :  { %v1927_v16 = vpop.f32.mrf.mxu0 }
 0xeb3   :  { %v1932_v35 = vrot.slane %v1927_v16, 2  ;;  %v1936_v30 = vrot.slane %v1927_v16, 4  ;;  %v1940_v36 = vrot.slane %v1927_v16, 6 }
 0xeb4   :  { %v2601_v39 = vpop.f32.mrf.mxu0 }
 0xeb5   :  { %1933 = vrot.lane.b32.xlu1 %v1932_v35, %s2832_s18 }
 0xeb9   :  { %1937 = vrot.lane.b32.xlu1 %v1936_v30, %s2830_s0 }
 0xebd   :  { %1941 = vrot.lane.b32.xlu1 %v1940_v36, %s2831_s30 }
 0xf27   :  { %v1934_v37 = vpop.permute.xlu1 %1933 }
 0xf28   :  { %v1944_v40 = vsel %vm177_vm1, %v1927_v16, %v1934_v37 }
 0xf2b   :  { %v1938_v38 = vpop.permute.xlu1 %1937 }
 0xf2c   :  { %v1946_v41 = vsel %vm1945_vm9, %v1944_v40, %v1938_v38 }
 0xf2f   :  { %v1942_v42 = vpop.permute.xlu1 %1941 }
 0xf30   :  { %v1948_v43 = vsel %vm1947_vm10, %v1946_v41, %v1942_v42 }
 0xf31   :  { %2635 = vmatmul.mubr.f32.vlgmr.msra.gmra.mxu1 %v1948_v43 }
 0xff1   :  { %v2038_v47 = vpop.f32.mrf.mxu1 }
 0xff2   :  { %v2039_v21 = vadd.f32 %v2263_v46, %v2038_v47 }
 0xff3   :  { %v2636_v22 = vpop.f32.mrf.mxu1 }
 0xff4   :  { %v2042_v48 = vmax.f32 %v2039_v21, 0.0 }
 0xff6   :  { %2646 = vmatmul.mubr.msk.f32.vlgmr.msra.gmra.mxu0 %vm177_vm1, %v2042_v48 }
0x10b6   :  { %v2123_v50 = vpop.f32.mrf.mxu0 }
0x10b7   :  { %v2124_v51 = vadd.f32 %v2264_v49, %v2123_v50 }
0x10b8   :  { %v2647_v59 = vpop.f32.mrf.mxu0 }
0x10b9   :  { %v2128_v7 = vsel %vm2127_vm11, %v2124_v51, -inf }
0x10ba   :  { %2129 = vmax.xlane.f32.xlu1 %v2128_v7 }
0x1143   :  { %v2130_v52 = vpop.xlane.xlu1 %2129 }
0x1144   :  { %v2131_v54 = vsub.f32 %v2124_v51, %v2130_v52 }
0x1146   :  { %v2132_v62 = vmul.f32 1.442695, %v2131_v54 }
0x1148   :  { %2781 = vpow2.f32 %v2132_v62 }
0x1155   :  { %v2782_v63 = vpop.eup %2781 }
0x1156   :  { %v2134_v24 = vsel %vm2127_vm11, %v2782_v63, 0.0 }
0x1157   :  { %2135 = vadd.xlane.f32.xlu0 %v2134_v24 }
0x11e0   :  { %v2136_v55 = vpop.xlane.xlu0 %2135 }
0x11e1   :  { %2783 = vlog2.f32 %v2136_v55 }
0x11ee   :  { %v2784_v32 = vpop.eup %2783 }
0x11ef   :  { %v2138_v0 = vmul.f32 0.6931472, %v2784_v32 }
0x11f1   :  { %v2139_v56 = vsub.f32 %v2131_v54, %v2138_v0 }
0x11f3   :  { %v2142_v25 = vmul.f32 %v2141_v57, %v2139_v56  ;;  %2140 = vst.msk [vmem:[#allocation2] sm:$0x3] %vm2127_vm11, %v2139_v56 }
0x11f5   :  { %v2143_v14 = vsel %vm2127_vm11, %v2142_v25, 0.0 }
0x11f6   :  { %2144 = vadd.xlane.f32.xlu1 %v2143_v14 }
0x11f7   :  { %2796 = shalt.err (!%p2793_p4)
}
0x11f8   :  { %2169 = dma.vmem_to_hbm [thread:$0]  %s2167_s11, 32, %s3510_s16, [#allocation3]   ;;  %vm2158_vm12 = vcmask 0  }
0x11f9   :  { %s2835_s20 = smov [#allocation4]  }
0x11fa   :  { %s2176_s21 = sshll.u32 %s2835_s20, 4  ;;  %s2177_s21 = int_to_ptr.vmem [resolvable:$true] %s2176_s21 }
0x11fb   :  { %s2805_s8 = scalar_lea.vmem %s2177_s21, 16  ;;  %s2809_s16 = scalar_lea.vmem %s2177_s21, 32 }
0x11fc   :  { %p2806_p5 = scmp.ne.s32.totalorder %s2177_s21, %s2805_s8  ;;  %p2810_p6 = scmp.lt.s32.totalorder %s2177_s21, %s2177_s21 }
0x11fd   :  { %p2811_p7 = scmp.lt.s32.totalorder %s2809_s16, %s2805_s8 }
0x11ff   :  { %p2812_p8 = por %p2811_p7, %p2810_p6 }
0x1201   :  { %p2813_p9 = pnand %p2812_p8, %p2806_p5 }
0x127f   :  { %v2145_v6 = vpop.xlane.xlu1 %2144 }
0x1280   :  { %v2146_v33 = vrot.slane %v2145_v6, 4 }
0x1282   :  { %v2147_v1 = vadd.f32 %v2146_v33, %v2145_v6 }
0x1284   :  { %v2148_v2 = vrot.slane %v2147_v1, 2 }
0x1286   :  { %v2149_v26 = vadd.f32 %v2148_v2, %v2147_v1 }
0x1288   :  { %v2150_v3 = vrot.slane %v2149_v26, 1 }
0x128a   :  { %v2151_v17 = vadd.f32 %v2150_v3, %v2149_v26 }
0x128c   :  { %2648 = vpush %v2151_v17 }
0x12bd   :  { %s2649_s3 = spop %2648 }
0x12be   :  { %s2153_s4 = ssub.f32 0.0, %s2649_s3 }
0x12c0   :  { %s2156_s22 = smul.f32 0.5, %s2153_s4 }
0x12c2   :  { %v2157_v34 = vstv %s2156_s22 }
0x12c3   :  { %2159 = vst.msk [vmem:[#allocation4] sm:$0x1] %vm2158_vm12, %v2157_v34 }
0x12c4   :  { %2816 = shalt.err (!%p2813_p9)
}
0x12c5   :  { %2179 = dma.vmem_to_hbm [thread:$0]  %s2177_s21, 16, %s3511_s17, [#allocation5]  }
0x12c6   :  { %2825 = dma.done.wait [#allocation3], 32  }
0x12c7   :  { %2826 = vsyncadd [#allocation3], 4294967264 }
0x12c8   :  { %2827 = dma.done.wait [#allocation5], 16  }
0x12c9   :  { %2828 = vsyncadd [#allocation5], 4294967280 }
0x12ca   :  { %2186 = vsyncpa [#allocation3], 1 }
0x12cb   :  { %2187 = vsyncpa [#allocation5], 1 }

</bundles_post_ra>
